<compile_context>
chip_gen: v7x
topology: tpu7x:2x2x1
jax: 0.10.0
libtpu: 0.0.40
codegen_flags: <defaults>
</compile_context>

<pallas_src>
import jax
import jax.numpy as jnp
from jax.experimental import pallas as pl
from jax.experimental.pallas import tpu as pltpu


def weighting_kernel(x_ref, wcb_ref, bcb_ref, red_ref, exp_ref, o_ref):
    # x tile: (tm, G*D), lane-dense (G original rows packed per VMEM row).
    x = x_ref[...].astype(jnp.float32)

    # Fused affine map for all G packed rows at once (block-diagonal Wc).
    s = jnp.dot(x, wcb_ref[...], preferred_element_type=jnp.float32)        # (tm, G*P)

    # Per-original-row squared norm via a block-diag ones reducer on the MXU.
    sq = jnp.dot(x * x, red_ref[...], preferred_element_type=jnp.float32)   # (tm, G)

    # F.normalize eps: 1/max(||x||,1e-12) == rsqrt(max(||x||^2,1e-24)) -> one EUP op.
    inv = jax.lax.rsqrt(jnp.maximum(sq, 1e-24))                             # (tm, G)

    # Expand the per-row scale to the G*P output lanes (tiny ones-expander matmul).
    inv_e = jnp.dot(inv, exp_ref[...], preferred_element_type=jnp.float32)  # (tm, G*P)

    o_ref[...] = (s * inv_e + bcb_ref[...]).astype(o_ref.dtype)


def _round_up(x, m):
    return ((x + m - 1) // m) * m


def _fused_affine(params):
    """Collapse the activation-free Linear stack into Wc (D, P), bc (P,)."""
    w1, b1, w2, b2, w3, b3 = params
    f32 = jnp.float32
    w1f, w2f, w3f = w1.astype(f32), w2.astype(f32), w3.astype(f32)
    b1f, b2f, b3f = b1.astype(f32), b2.astype(f32), b3.astype(f32)
    wc = (w1f @ w2f) @ w3f
    bc = (b1f @ w2f + b2f) @ w3f + b3f
    return wc, bc


def weighting_forward(feature, params, label=None, *, row_tile=32768,
                      pallas_min_rows=2048):
    """feature: (..., bert_dim) -> weight_logit: (..., polarities_dim).

    `label` is accepted for signature parity with the PyTorch module but (as in
    the original forward) is unused.
    """
    del label
    D = feature.shape[-1]
    wc, bc = _fused_affine(params)
    P = wc.shape[1]

    lead = feature.shape[:-1]
    x = feature.reshape(-1, D)
    N = x.shape[0]

    # --- Tiny-N fast path: kernel launch + ~0.35 us/step pipeline overhead
    #     dominates below a few thousand rows; a fused XLA expression wins there.
    if N < pallas_min_rows:
        xf = x.astype(jnp.float32)
        inv = jax.lax.rsqrt(jnp.maximum(jnp.sum(xf * xf, -1, keepdims=True), 1e-24))
        out = ((xf @ wc) * inv + bc).astype(feature.dtype)
        return out.reshape(*lead, P)

    # --- Lane-dense packing: G consecutive rows share one 128-lane VMEM row. ---
    G = 128 // D if (D <= 128 and 128 % D == 0) else 1

    if N % G != 0:
        # TODO(synk): rare ragged case pays one extra HBM copy for the pad.
        x = jnp.pad(x, ((0, G - N % G), (0, 0)))
    NG = x.shape[0] // G
    xd = x.reshape(NG, G * D)

    f32 = jnp.float32
    eye = jnp.eye(G, dtype=f32)
    wcb = jnp.kron(eye, wc)                          # (G*D, G*P) block-diag fused weight
    red = jnp.kron(eye, jnp.ones((D, 1), f32))       # (G*D, G)   per-row sq-norm reducer
    exp = jnp.kron(eye, jnp.ones((1, P), f32))       # (G,  G*P)  per-row scale expander
    bcb = jnp.tile(bc.reshape(1, P), (1, G))         # (1,  G*P)  fused bias, tiled

    # --- Dense-row tile: large (default 32768 original rows -> ~4 MiB of x per
    #     step) to amortize the ~0.35 us/step pipeline overhead, capped so (a) we
    #     never over-allocate for the actual problem and (b) the grid has >= 2
    #     steps so v7x's two TensorCores both get work.  Double-buffered x + out
    #     stays under ~9 MiB, within even v5e's 16 MiB default scoped VMEM.
    tm = _round_up(min(max(row_tile // G, 8), NG), 8)
    tm = min(tm, max(8, _round_up(pl.cdiv(NG, 2), 8)))
    grid = (pl.cdiv(NG, tm),)

    out = pl.pallas_call(
        weighting_kernel,
        out_shape=jax.ShapeDtypeStruct((NG, G * P), feature.dtype),
        grid_spec=pltpu.PrefetchScalarGridSpec(
            num_scalar_prefetch=0,
            grid=grid,
            in_specs=[
                pl.BlockSpec((tm, G * D), lambda i: (i, 0)),     # lane-dense rows
                pl.BlockSpec((G * D, G * P), lambda i: (0, 0)),  # block-diag Wc
                pl.BlockSpec((1, G * P), lambda i: (0, 0)),      # fused bias
                pl.BlockSpec((G * D, G), lambda i: (0, 0)),      # sq-norm reducer
                pl.BlockSpec((G, G * P), lambda i: (0, 0)),      # scale expander
            ],
            out_specs=pl.BlockSpec((tm, G * P), lambda i: (i, 0)),
        ),
        compiler_params=pltpu.CompilerParams(
            dimension_semantics=("parallel",),
        ),
    )(xd, wcb, bcb, red, exp)

    # (NG, G*P) is row-major contiguous with (NG*G, P): undo packing/padding for free.
    return out.reshape(NG * G, P)[:N].reshape(*lead, P)


def init_params(key, bert_dim, polarities_dim, dtype=jnp.float32):
    """Deterministic synthetic init matching nn.Linear shapes (stored transposed)."""
    dims = [(bert_dim, bert_dim // 2),
            (bert_dim // 2, bert_dim // 4),
            (bert_dim // 4, polarities_dim)]
    params = []
    for (din, dout) in dims:
        key, kw, kb = jax.random.split(key, 3)
        bound = 1.0 / (din ** 0.5)  # PyTorch default Linear init range
        w = jax.random.uniform(kw, (din, dout), dtype, -bound, bound)
        b = jax.random.uniform(kb, (dout,), dtype, -bound, bound)
        params += [w, b]
    return tuple(params)


def reference_forward(feature, params):
    """Pure-JAX reference mirroring the PyTorch module (sequential Linears)."""
    w1, b1, w2, b2, w3, b3 = params
    denom = jnp.maximum(
        jnp.sqrt(jnp.sum(feature * feature, axis=-1, keepdims=True)), 1e-12)
    xn = feature / denom
    h = xn @ w1 + b1
    h = h @ w2 + b2
    return h @ w3 + b3


if __name__ == "__main__":
    # opt.bert_dim = 32, opt.polarities_dim = 3 ; feature: (batch, seq, bert_dim)
    bert_dim, polarities_dim = 32, 3

    key = jax.random.PRNGKey(0)
    k1, k2, k3, kl, kp = jax.random.split(key, 5)
    params = init_params(kp, bert_dim, polarities_dim)

    # Small shape from the module spec (batch=2, seq=8) -> fused-XLA fast path.
    feature = jax.random.normal(k1, (2, 8, bert_dim), jnp.float32)
    label = jax.random.randint(kl, (2, 8), 0, polarities_dim)  # unused by forward
    out = jax.block_until_ready(weighting_forward(feature, params, label))
    assert out.shape == (2, 8, polarities_dim)
    assert jnp.allclose(out, reference_forward(feature, params), atol=1e-4, rtol=1e-4)

    # Medium shape -> Pallas lane-dense path (2 grid steps, megacore-splittable).
    feature_med = jax.random.normal(k2, (4, 1024, bert_dim), jnp.float32)
    out_med = jax.block_until_ready(weighting_forward(feature_med, params))
    assert out_med.shape == (4, 1024, polarities_dim)
    assert jnp.allclose(out_med, reference_forward(feature_med, params),
                        atol=1e-4, rtol=1e-4)

    # Ragged N (not a multiple of the packing factor nor the tile) -> pad +
    # masked last block path.
    feature_rag = jax.random.normal(k3, (3, 1367, bert_dim), jnp.float32)
    out_rag = jax.block_until_ready(weighting_forward(feature_rag, params))
    assert out_rag.shape == (3, 1367, polarities_dim)
    assert jnp.allclose(out_rag, reference_forward(feature_rag, params),
                        atol=1e-4, rtol=1e-4)

    print("KERNEL_OK")
</pallas_src>

<mosaic_0001>
module attributes {stable_mosaic.version = 11 : i64} {
  func.func @weighting_kernel(%arg0: i32, %arg1: memref<512x128xf32, #tpu.memory_space<vmem>>, %arg2: memref<128x12xf32, #tpu.memory_space<vmem>>, %arg3: memref<1x12xf32, #tpu.memory_space<vmem>>, %arg4: memref<128x4xf32, #tpu.memory_space<vmem>>, %arg5: memref<4x12xf32, #tpu.memory_space<vmem>>, %arg6: memref<512x12xf32, #tpu.memory_space<vmem>>) attributes {dimension_semantics = [#tpu.dimension_semantics<parallel>], iteration_bounds = array<i64: 2>, scalar_prefetch = 0 : i64, scratch_operands = 0 : i64, tpu.core_type = #tpu.core_type<tc>, window_params = [{transform_indices = @transform_0, window_bounds = array<i64: 512, 128>}, {pipeline_mode = #tpu.pipeline_mode<synchronous>, transform_indices = @transform_1, window_bounds = array<i64: 128, 12>}, {pipeline_mode = #tpu.pipeline_mode<synchronous>, transform_indices = @transform_2, window_bounds = array<i64: 1, 12>}, {pipeline_mode = #tpu.pipeline_mode<synchronous>, transform_indices = @transform_3, window_bounds = array<i64: 128, 4>}, {pipeline_mode = #tpu.pipeline_mode<synchronous>, transform_indices = @transform_4, window_bounds = array<i64: 4, 12>}, {transform_indices = @transform_5, window_bounds = array<i64: 512, 12>}]} {
    %c0 = arith.constant 0 : index
    %c0_0 = arith.constant 0 : index
    %0 = vector.load %arg1[%c0, %c0_0] : memref<512x128xf32, #tpu.memory_space<vmem>>, vector<512x128xf32>
    %c0_1 = arith.constant 0 : index
    %c0_2 = arith.constant 0 : index
    %1 = vector.load %arg2[%c0_1, %c0_2] : memref<128x12xf32, #tpu.memory_space<vmem>>, vector<128x12xf32>
    %cst = arith.constant dense<0.000000e+00> : vector<512x12xf32>
    %2 = tpu.matmul %0, %1, %cst {dimension_numbers = #tpu.dot_dimension_numbers<[1], [0], [0], [1], [0, 0, 1, 1], [], []>} : vector<512x128xf32>, vector<128x12xf32>, vector<512x12xf32> -> vector<512x12xf32>
    %3 = arith.mulf %0, %0 : vector<512x128xf32>
    %c0_3 = arith.constant 0 : index
    %c0_4 = arith.constant 0 : index
    %4 = vector.load %arg4[%c0_3, %c0_4] : memref<128x4xf32, #tpu.memory_space<vmem>>, vector<128x4xf32>
    %cst_5 = arith.constant dense<0.000000e+00> : vector<512x4xf32>
    %5 = tpu.matmul %3, %4, %cst_5 {dimension_numbers = #tpu.dot_dimension_numbers<[1], [0], [0], [1], [0, 0, 1, 1], [], []>} : vector<512x128xf32>, vector<128x4xf32>, vector<512x4xf32> -> vector<512x4xf32>
    %cst_6 = arith.constant 1.000000e-24 : f32
    %6 = vector.broadcast %cst_6 : f32 to vector<512x4xf32>
    %7 = arith.maximumf %5, %6 : vector<512x4xf32>
    %8 = math.rsqrt %7 : vector<512x4xf32>
    %c0_7 = arith.constant 0 : index
    %c0_8 = arith.constant 0 : index
    %9 = vector.load %arg5[%c0_7, %c0_8] : memref<4x12xf32, #tpu.memory_space<vmem>>, vector<4x12xf32>
    %cst_9 = arith.constant dense<0.000000e+00> : vector<512x12xf32>
    %10 = tpu.matmul %8, %9, %cst_9 {dimension_numbers = #tpu.dot_dimension_numbers<[1], [0], [0], [1], [0, 0, 1, 1], [], []>} : vector<512x4xf32>, vector<4x12xf32>, vector<512x12xf32> -> vector<512x12xf32>
    %11 = arith.mulf %2, %10 : vector<512x12xf32>
    %c0_10 = arith.constant 0 : index
    %c0_11 = arith.constant 0 : index
    %12 = vector.load %arg3[%c0_10, %c0_11] : memref<1x12xf32, #tpu.memory_space<vmem>>, vector<1x12xf32>
    %13 = vector.broadcast %12 : vector<1x12xf32> to vector<512x12xf32>
    %14 = arith.addf %11, %13 : vector<512x12xf32>
    %c0_12 = arith.constant 0 : index
    %c0_13 = arith.constant 0 : index
    %15 = vector.load %arg6[%c0_12, %c0_13] : memref<512x12xf32, #tpu.memory_space<vmem>>, vector<512x12xf32>
    tpu.vector_store %arg6[%c0_12, %c0_13], %14 {strides = array<i32>} : memref<512x12xf32, #tpu.memory_space<vmem>>, vector<512x12xf32>,
    return
  }
  func.func @transform_0(%arg0: i32) -> (i32, i32) {
    %c0_i32 = arith.constant 0 : i32
    %c0_i32_0 = arith.constant 0 : i32
    return %arg0, %c0_i32 : i32, i32
  }
  func.func @transform_1(%arg0: i32) -> (i32, i32) {
    %c0_i32 = arith.constant 0 : i32
    %c0_i32_0 = arith.constant 0 : i32
    %c0_i32_1 = arith.constant 0 : i32
    return %c0_i32, %c0_i32_0 : i32, i32
  }
  func.func @transform_2(%arg0: i32) -> (i32, i32) {
    %c0_i32 = arith.constant 0 : i32
    %c0_i32_0 = arith.constant 0 : i32
    %c0_i32_1 = arith.constant 0 : i32
    return %c0_i32, %c0_i32_0 : i32, i32
  }
  func.func @transform_3(%arg0: i32) -> (i32, i32) {
    %c0_i32 = arith.constant 0 : i32
    %c0_i32_0 = arith.constant 0 : i32
    %c0_i32_1 = arith.constant 0 : i32
    return %c0_i32, %c0_i32_0 : i32, i32
  }
  func.func @transform_4(%arg0: i32) -> (i32, i32) {
    %c0_i32 = arith.constant 0 : i32
    %c0_i32_0 = arith.constant 0 : i32
    %c0_i32_1 = arith.constant 0 : i32
    return %c0_i32, %c0_i32_0 : i32, i32
  }
  func.func @transform_5(%arg0: i32) -> (i32, i32) {
    %c0_i32 = arith.constant 0 : i32
    %c0_i32_0 = arith.constant 0 : i32
    return %arg0, %c0_i32 : i32, i32
  }
}

</mosaic_0001>

<bundles_post_ra>
// kernel: tpu_custom_call.1
= control target key start
LH: loop header
LB: loop body
LE: loop exit
PB: predicated region body
PF: predicated region fallthrough
CT: control target
= control target key end

     0   :  { %10 = vsyncpa [#allocation3], 0  ;;  %s4209_s0 = inlined_call_operand.hbm [shape: f32[1024,128], index: 0, kind: input, shape index: {}]   ;;  %s4210_s1 = inlined_call_operand.vmem [shape: f32[128,12], index: 1, kind: input, shape index: {}]   ;;  %s4211_s2 = inlined_call_operand.vmem [shape: f32[1,12], index: 2, kind: input, shape index: {}]   ;;  %s4212_s3 = inlined_call_operand.vmem [shape: f32[128,4], index: 3, kind: input, shape index: {}]   ;;  %s4213_s4 = inlined_call_operand.vmem [shape: f32[4,12], index: 4, kind: input, shape index: {}]   ;;  %s4214_s5 = inlined_call_operand.vmem [shape: f32[1024,12], index: 5, kind: output, shape index: {}]  }
   0x1   :  { %12 = vsyncpa [#allocation3 + $0x1], 0  ;;  %s3162_s18 = smov 0   ;;  %s3164_s19 = smov 0  }
   0x2   :  { %s3166_s20 = smov 0   ;;  %s3168_s21 = smov 0  }
   0x3 LB: > { %s2155_s22 = sadd.s32 4294967295, %s3127_s21   ;;  %s3182_s23 = sadd.s32 1, %s3127_s21   ;;  %s3127_s21 = sphi %s3168_s21, %s4264_s21   ;;  %s3123_s20 = sphi %s3166_s20, %s4263_s20   ;;  %s3119_s19 = sphi %s3164_s19, %s4262_s19   ;;  %s3115_s18 = sphi %s3162_s18, %s4261_s18  }
   0x4   : > { %s22_s24 = ssub.s32 %s3127_s21, %s3182_s23  ;;  %s25_s25 = sadd.s32 1, %s3123_s20 }
   0x5   : > { %p23_p0 = scmp.eq.s32.totalorder %s22_s24, 0  ;;  %p32_p1 = scmp.ne.s32.totalorder %s3123_s20, %s3119_s19 }
   0x6   : > { %p33_p2 = scmp.eq.s32.totalorder %s3127_s21, 0  ;;  %p38_p3 = scmp.ne.s32.totalorder %s3119_s19, %s3115_s18 }
   0x7   : > { %s3192_s26 = scalar_select %p23_p0, %s3123_s20, %s25_s25  }
   0x8   : > { %p34_p4 = por %p33_p2, %p32_p1  ;;  %p39_p5 = scmp.eq.s32.totalorder %s2155_s22, 0 }
   0x9   : > { %p2900_p6 = scmp.lt.s32.totalorder %s3127_s21, 2  ;;  %s184_s28 = sand.u32 1, %s3123_s20  }
   0xa   : > { %p3197_p7 = por %p39_p5, %p38_p3  ;;  %s2159_s29 = sshll.u32 %s184_s28, 9 }
   0xb   : > { %s2234_s30 = sshll.u32 %s3127_s21, 13  ;;  %s188_s9 = scalar_lea.vmem [#allocation2], %s2159_s29 }
   0xc   : > { %s3206_s8 = scalar_lea.hbm %s4209_s0, %s2234_s30  ;;  %s195_s10 = sshll.u32 %s188_s9, 4  ;;  %s3208_s10 = int_to_ptr.vmem [resolvable:$true] %s195_s10 }
   0xd   : > { %p3210_p8 = pnand %p2900_p6, %p34_p4  ;;  %s3215_s12 = scalar_lea.sflag [#allocation3], %s184_s28 }
   0xe   : > { %s3063_s13 = scalar_lea.hbm %s3206_s8, 8192  ;;  %s3068_s16 = scalar_lea.hbm %s4209_s0, 16384 }
   0xf   : > { %p3064_p10 = scmp.ne.s32.totalorder %s3206_s8, %s3063_s13  ;;  %p3065_p11 = pneg %p3210_p8 }
  0x10   : > { %p3069_p0 = scmp.lt.u32.totalorder %s3206_s8, %s4209_s0  ;;  %p3070_p1 = scmp.lt.u32.totalorder %s3068_s16, %s3063_s13 }
  0x11   : > { %p3066_p12 = pnand %p3065_p11, %p3064_p10  ;;  %p3072_p3 = scmp.lt.u32.totalorder %s3063_s13, %s3206_s8 }
  0x12   : > { %p3071_p2 = por %p3070_p1, %p3069_p0 }
  0x13   : > { %p3067_p13 = pneg %p3066_p12 }
  0x14   : > { %p3073_p4 = por %p3072_p3, %p3071_p2 }
  0x16   : > { %p3074_p5 = pnand %p3073_p4, %p3067_p13 }
  0x18   : > { %3077 = shalt.err (!%p3074_p5)
}
  0x19   : > { %s3078_s24 = scalar_lea.vmem %s3208_s10, 8192  ;;  %s3129_s25 = smov [#allocation2]  }
  0x1a   : > { %p3079_p6 = scmp.ne.s32.totalorder %s3208_s10, %s3078_s24  ;;  %s3083_s28 = sshll.u32 %s3129_s25, 4  ;;  %s3084_s28 = int_to_ptr.vmem [resolvable:$false] %s3083_s28 }
  0x1b   : > { %s3085_s29 = scalar_lea.vmem %s3084_s28, 16384  ;;  %p3086_p9 = scmp.lt.s32.totalorder %s3208_s10, %s3084_s28 }
  0x1c   : > { %p3081_p10 = pnand %p3079_p6, %p3065_p11  ;;  %p3087_p0 = scmp.lt.s32.totalorder %s3085_s29, %s3078_s24 }
  0x1e   : > { %p3082_p12 = pneg %p3081_p10  ;;  %p3088_p1 = por %p3087_p0, %p3086_p9 }
  0x20   : > { %p3089_p2 = pnand %p3088_p1, %p3082_p12 }
  0x22   : > { %3092 = shalt.err (!%p3089_p2)
}
  0x23   : > { %s3130_s30 = smov 128   ;;  %s3131_s6 = smov 8  }
  0x24   : > { %2899 = dma.hbm_to_vmem [thread:$0]  (!%p3210_p8), %s3206_s8, 8192, %s3208_s10, %s3215_s12, %s3130_s30, %s3130_s30, %s3131_s6  }
  0x25   : > { %p203_p11 = scmp.lt.s32.totalorder %s3127_s21, 3  ;;  %p4222_p13 = scmp.ge.s32.totalorder %s3127_s21, 1 }
  0x27   : > { %p204_p3 = pnand %p4222_p13, %p203_p11 }
  0x29   : > { %207 = sbr.rel (%p204_p3) target bundleno = 720 (0x2d0), region = 40 }
  0x30   : > { %s209_s7 = sand.u32 1, %s3119_s19  }
  0x31   : > { %s2163_s9 = sshll.u32 %s209_s7, 9  ;;  %s210_s13 = scalar_lea.sflag [#allocation3], %s209_s7 }
  0x32   : > { %s3247_s14 = scalar_lea.vmem [#allocation2], %s2163_s9 }
  0x33   : > { %3110 = dma.done.wait (%p3197_p7), %s210_s13, 8192  }
  0x34   : > { %3112 = vsyncadd (%p3197_p7), %s210_s13, 4294959104  ;;  %v311_v0 = vld [vmem:[%s4210_s1] sm:$0xff]  ;;  %v312_v1 = vld [vmem:[%s4210_s1 + $0x8] sm:$0xff]  ;;  %vm1499_vm0 = vcmask 1043456   ;;  %vm1306_vm1 = vcmask 31744   ;;  %s2164_s28 = sshll.u32 %s2155_s22, 6 }
  0x35   : > { %v313_v2 = vld [vmem:[%s4210_s1 + $0x10] sm:$0xff]  ;;  %v2814_v3 = vpack.c.bf16 %v312_v1, %v311_v0  ;;  %v314_v4 = vld [vmem:[%s4210_s1 + $0x18] sm:$0xff]  ;;  %v315_v6 = vld [vmem:[%s4210_s1 + $0x20] sm:$0xff]  ;;  %p242_p7 = scmp.lt.s32.totalorder %s2164_s28, 127  ;;  %vm2023_vm2 = vcmask 97280  }
  0x36   : > { %v2818_v5 = vpack.c.bf16 %v314_v4, %v313_v2  ;;  %v316_v7 = vld [vmem:[%s4210_s1 + $0x28] sm:$0xff]  ;;  %v3272_v9 = vld [vmem:[%s3247_s14 + $0x100] sm:$0xff]  ;;  %v317_v10 = vld [vmem:[%s4210_s1 + $0x30] sm:$0xff] }
  0x37   : > { %2878 = vmatprep.subr.bf16.mxu1 %v2814_v3  ;;  %2815 = vmatprep.subr.bf16.mxu0 %v2814_v3  ;;  %v2822_v8 = vpack.c.bf16 %v316_v7, %v315_v6  ;;  %v318_v11 = vld [vmem:[%s4210_s1 + $0x38] sm:$0xff]  ;;  %v319_v13 = vld [vmem:[%s4210_s1 + $0x40] sm:$0xff]  ;;  %v320_v14 = vld [vmem:[%s4210_s1 + $0x48] sm:$0xff]  ;;  %s4266_s28 = smov (!%p242_p7, %s2164_s28), 127 }
  0x38   : > { %2886 = vmatpush3.bf16.msra.mxu1 %v2814_v3  ;;  %2817 = vmatpush3.bf16.msra.mxu0 %v2814_v3  ;;  %v2826_v12 = vpack.c.bf16 %v318_v11, %v317_v10  ;;  %v2830_v15 = vpack.c.bf16 %v320_v14, %v319_v13  ;;  %v321_v16 = vld [vmem:[%s4210_s1 + $0x50] sm:$0xff]  ;;  %v322_v17 = vld [vmem:[%s4210_s1 + $0x58] sm:$0xff]  ;;  %v323_v19 = vld [vmem:[%s4210_s1 + $0x60] sm:$0xff]  ;;  %s2165_s29 = sshll.u32 %s4266_s28, 3 }
  0x39   : > { %2879 = vmatprep.subr.bf16.mxu1 %v2818_v5  ;;  %2819 = vmatprep.subr.bf16.mxu0 %v2818_v5  ;;  %v2834_v18 = vpack.c.bf16 %v322_v17, %v321_v16  ;;  %v324_v20 = vld [vmem:[%s4210_s1 + $0x68] sm:$0xff]  ;;  %v3300_v22 = vld [vmem:[%s3247_s14] sm:$0xff]  ;;  %v325_v23 = vld [vmem:[%s4210_s1 + $0x70] sm:$0xff]  ;;  %s3939_s13 = scalar_lea.vmem %s4214_s5, %s2165_s29 }
  0x3a   : > { %2540 = vmatprep.mubr.f32.mxu1 %v3272_v9  ;;  %v2838_v21 = vpack.c.bf16 %v324_v20, %v323_v19  ;;  %v326_v24 = vld [vmem:[%s4210_s1 + $0x78] sm:$0xff]  ;;  %2492 = vmatprep.mubr.f32.mxu0 %v3300_v22  ;;  %v776_v26 = vld [vmem:[%s4212_s3] sm:$0xff]  ;;  %v777_v27 = vld [vmem:[%s4212_s3 + $0x8] sm:$0xff] }
  0x3b   : > { %v2842_v25 = vpack.c.bf16 %v326_v24, %v325_v23  ;;  %v2846_v28 = vpack.c.bf16 %v777_v27, %v776_v26  ;;  %v778_v29 = vld [vmem:[%s4212_s3 + $0x10] sm:$0xff]  ;;  %v779_v30 = vld [vmem:[%s4212_s3 + $0x18] sm:$0xff]  ;;  %v3322_v31 = vld [vmem:[%s3247_s14 + $0x108] sm:$0xff] }
  0x3c   : > { %2887 = vmatpush3.bf16.msra.mxu1 %v2818_v5  ;;  %2821 = vmatpush3.bf16.msra.mxu0 %v2818_v5  ;;  %v3325_v32 = vld [vmem:[%s3247_s14 + $0x110] sm:$0xff]  ;;  %v2850_v33 = vpack.c.bf16 %v779_v30, %v778_v29  ;;  %v780_v34 = vld [vmem:[%s4212_s3 + $0x20] sm:$0xff]  ;;  %v781_v35 = vld [vmem:[%s4212_s3 + $0x28] sm:$0xff] }
  0x3d   : > { %2880 = vmatprep.subr.bf16.mxu1 %v2822_v8  ;;  %2823 = vmatprep.subr.bf16.mxu0 %v2822_v8  ;;  %v3334_v36 = vld [vmem:[%s3247_s14 + $0x8] sm:$0xff]  ;;  %v3340_v37 = vld [vmem:[%s3247_s14 + $0x118] sm:$0xff]  ;;  %v3343_v38 = vld [vmem:[%s3247_s14 + $0x10] sm:$0xff]  ;;  %v2854_v40 = vpack.c.bf16 %v781_v35, %v780_v34 }
  0x3e   : > { %v3346_v39 = vld [vmem:[%s3247_s14 + $0x120] sm:$0xff]  ;;  %v782_v41 = vld [vmem:[%s4212_s3 + $0x30] sm:$0xff]  ;;  %v783_v42 = vld [vmem:[%s4212_s3 + $0x38] sm:$0xff] }
  0x3f   : > { %v3356_v43 = vld [vmem:[%s3247_s14 + $0x18] sm:$0xff]  ;;  %v3362_v44 = vld [vmem:[%s3247_s14 + $0x128] sm:$0xff]  ;;  %v3365_v45 = vld [vmem:[%s3247_s14 + $0x20] sm:$0xff]  ;;  %v2858_v47 = vpack.c.bf16 %v783_v42, %v782_v41 }
  0x40   : > { %2888 = vmatpush3.bf16.msra.mxu1 %v2822_v8  ;;  %2825 = vmatpush3.bf16.msra.mxu0 %v2822_v8  ;;  %v3368_v46 = vld [vmem:[%s3247_s14 + $0x130] sm:$0xff]  ;;  %v784_v48 = vld [vmem:[%s4212_s3 + $0x40] sm:$0xff]  ;;  %v785_v49 = vld [vmem:[%s4212_s3 + $0x48] sm:$0xff] }
  0x41   : > { %2881 = vmatprep.subr.bf16.mxu1 %v2826_v12  ;;  %2827 = vmatprep.subr.bf16.mxu0 %v2826_v12  ;;  %v3378_v50 = vld [vmem:[%s3247_s14 + $0x28] sm:$0xff]  ;;  %v3384_v51 = vld [vmem:[%s3247_s14 + $0x138] sm:$0xff]  ;;  %v3387_v52 = vld [vmem:[%s3247_s14 + $0x30] sm:$0xff]  ;;  %v2862_v54 = vpack.c.bf16 %v785_v49, %v784_v48 }
  0x42   : > { %v3390_v53 = vld [vmem:[%s3247_s14 + $0x140] sm:$0xff]  ;;  %v786_v55 = vld [vmem:[%s4212_s3 + $0x50] sm:$0xff]  ;;  %v787_v56 = vld [vmem:[%s4212_s3 + $0x58] sm:$0xff] }
  0x43   : > { %v3400_v57 = vld [vmem:[%s3247_s14 + $0x38] sm:$0xff]  ;;  %v3406_v58 = vld [vmem:[%s3247_s14 + $0x148] sm:$0xff]  ;;  %v3409_v59 = vld [vmem:[%s3247_s14 + $0x40] sm:$0xff]  ;;  %v2866_v61 = vpack.c.bf16 %v787_v56, %v786_v55 }
  0x44   : > { %2889 = vmatpush3.bf16.msra.mxu1 %v2826_v12  ;;  %2829 = vmatpush3.bf16.msra.mxu0 %v2826_v12  ;;  %v3412_v60 = vld [vmem:[%s3247_s14 + $0x150] sm:$0xff]  ;;  %v788_v62 = vld [vmem:[%s4212_s3 + $0x60] sm:$0xff]  ;;  %v789_v63 = vld [vmem:[%s4212_s3 + $0x68] sm:$0xff] }
  0x45   : > { %2882 = vmatprep.subr.bf16.mxu1 %v2830_v15  ;;  %2831 = vmatprep.subr.bf16.mxu0 %v2830_v15  ;;  %v3422_v0 = vld [vmem:[%s3247_s14 + $0x48] sm:$0xff]  ;;  %v3428_v1 = vld [vmem:[%s3247_s14 + $0x158] sm:$0xff]  ;;  %v3431_v2 = vld [vmem:[%s3247_s14 + $0x50] sm:$0xff]  ;;  %v2870_v4 = vpack.c.bf16 %v789_v63, %v788_v62 }
  0x46   : > { %v3434_v3 = vld [vmem:[%s3247_s14 + $0x160] sm:$0xff]  ;;  %v790_v5 = vld [vmem:[%s4212_s3 + $0x70] sm:$0xff]  ;;  %v791_v6 = vld [vmem:[%s4212_s3 + $0x78] sm:$0xff] }
  0x47   : > { %v3444_v7 = vld [vmem:[%s3247_s14 + $0x58] sm:$0xff]  ;;  %v3450_v8 = vld [vmem:[%s3247_s14 + $0x168] sm:$0xff]  ;;  %v3453_v10 = vld [vmem:[%s3247_s14 + $0x60] sm:$0xff]  ;;  %v2874_v12 = vpack.c.bf16 %v791_v6, %v790_v5 }
  0x48   : > { %2890 = vmatpush3.bf16.msra.mxu1 %v2830_v15  ;;  %2833 = vmatpush3.bf16.msra.mxu0 %v2830_v15  ;;  %v3456_v11 = vld [vmem:[%s3247_s14 + $0x170] sm:$0xff]  ;;  %v3460_v13 = vld [vmem:[%s3247_s14 + $0x68] sm:$0xff]  ;;  %v3466_v14 = vld [vmem:[%s3247_s14 + $0x178] sm:$0xff] }
  0x49   : > { %2883 = vmatprep.subr.bf16.mxu1 %v2834_v18  ;;  %2835 = vmatprep.subr.bf16.mxu0 %v2834_v18  ;;  %v3469_v15 = vld [vmem:[%s3247_s14 + $0x70] sm:$0xff]  ;;  %v3472_v16 = vld [vmem:[%s3247_s14 + $0x180] sm:$0xff]  ;;  %v3476_v17 = vld [vmem:[%s3247_s14 + $0x78] sm:$0xff] }
  0x4a   : > { %v3485_v19 = vld [vmem:[%s3247_s14 + $0x80] sm:$0xff]  ;;  %v3488_v20 = vld [vmem:[%s3247_s14 + $0x190] sm:$0xff]  ;;  %v3501_v24 = vld [vmem:[%s3247_s14 + $0x198] sm:$0xff] }
  0x4b   : > { %v3496_v23 = vld [vmem:[%s3247_s14 + $0x90] sm:$0xff]  ;;  %v3508_v26 = vld [vmem:[%s3247_s14 + $0x98] sm:$0xff]  ;;  %v3512_v27 = vld [vmem:[%s3247_s14 + $0xa0] sm:$0xff] }
  0x4c   : > { %2891 = vmatpush3.bf16.msra.mxu1 %v2834_v18  ;;  %2837 = vmatpush3.bf16.msra.mxu0 %v2834_v18  ;;  %v3482_v18 = vld [vmem:[%s3247_s14 + $0x188] sm:$0xff]  ;;  %v3521_v29 = vld [vmem:[%s3247_s14 + $0x1b0] sm:$0xff]  ;;  %v3533_v34 = vld [vmem:[%s3247_s14 + $0x1b8] sm:$0xff] }
  0x4d   : > { %2884 = vmatprep.subr.bf16.mxu1 %v2838_v21  ;;  %2839 = vmatprep.subr.bf16.mxu0 %v2838_v21  ;;  %v3524_v30 = vld [vmem:[%s3247_s14 + $0xa8] sm:$0xff]  ;;  %v3537_v35 = vld [vmem:[%s3247_s14 + $0x1c0] sm:$0xff]  ;;  %v3560_v49 = vld [vmem:[%s3247_s14 + $0xd0] sm:$0xff] }
  0x4e   : > { %v3544_v41 = vld [vmem:[%s3247_s14 + $0xc0] sm:$0xff]  ;;  %v3549_v42 = vld [vmem:[%s3247_s14 + $0x1c8] sm:$0xff]  ;;  %v3572_v56 = vld [vmem:[%s3247_s14 + $0xd8] sm:$0xff] }
  0x4f   : > { %v3556_v48 = vld [vmem:[%s3247_s14 + $0xc8] sm:$0xff]  ;;  %v3569_v55 = vld [vmem:[%s3247_s14 + $0x1e0] sm:$0xff]  ;;  %v3585_v63 = vld [vmem:[%s3247_s14 + $0x1f0] sm:$0xff] }
  0x50   : > { %2892 = vmatpush3.bf16.msra.mxu1 %v2838_v21  ;;  %2841 = vmatpush3.bf16.msra.mxu0 %v2838_v21  ;;  %v3492_v21 = vld [vmem:[%s3247_s14 + $0x88] sm:$0xff]  ;;  %4224 = vst [vmem:[#allocation6_spill] sm:$0xff] %v3569_v55  ;;  %4226 = vst [vmem:[#allocation8_spill] sm:$0xff] %v3585_v63  ;;  %v3592_v5 = vld [vmem:[%s3247_s14 + $0xf0] sm:$0xff] }
  0x51   : > { %2885 = vmatprep.subr.bf16.mxu1 %v2842_v25  ;;  %2843 = vmatprep.subr.bf16.mxu0 %v2842_v25  ;;  %v3581_v62 = vld [vmem:[%s3247_s14 + $0x1e8] sm:$0xff]  ;;  %v3597_v6 = vld [vmem:[%s3247_s14 + $0x1f8] sm:$0xff] }
  0x52   : > { %4225 = vst [vmem:[#allocation7_spill] sm:$0xff] %v3581_v62  ;;  %4227 = vst [vmem:[#allocation9_spill] sm:$0xff] %v3597_v6 }
  0x54   : > { %2893 = vmatpush3.bf16.msra.mxu1 %v2842_v25  ;;  %2845 = vmatpush3.bf16.msra.mxu0 %v2842_v25  ;;  %v3505_v25 = vld [vmem:[%s3247_s14 + $0x1a0] sm:$0xff] }
  0x55   : > { %2847 = vmatprep.subr.bf16.mxu1 %v2846_v28 }
  0x57   : > { %2541 = vmatmul.mubr.f32.vlgmr.msra.gmra.mrb[0].mxu1 %v3322_v31  ;;  %2493 = vmatmul.mubr.f32.vlgmr.msra.gmra.mrb[0].mxu0 %v3334_v36 }
  0x58   : > { %2849 = vmatpush3.bf16.msra.mxu1 %v2846_v28  ;;  %2543 = vmatprep.mubr.f32.mxu1 %v3325_v32  ;;  %v3517_v28 = vld [vmem:[%s3247_s14 + $0x1a8] sm:$0xff] }
  0x59   : > { %2851 = vmatprep.subr.bf16.mxu1 %v2850_v33  ;;  %2495 = vmatprep.mubr.f32.mxu0 %v3343_v38 }
  0x5b   : > { %2544 = vmatmul.mubr.f32.gmra.mrb[2].mxu1 %v3340_v37  ;;  %2496 = vmatmul.mubr.f32.gmra.mrb[2].mxu0 %v3356_v43 }
  0x5c   : > { %2546 = vmatprep.mubr.f32.mxu1 %v3346_v39  ;;  %2853 = vmatpush3.bf16.msra.mxu1 %v2850_v33  ;;  %v3528_v33 = vld [vmem:[%s3247_s14 + $0xb0] sm:$0xff] }
  0x5d   : > { %2855 = vmatprep.subr.bf16.mxu1 %v2854_v40  ;;  %2498 = vmatprep.mubr.f32.mxu0 %v3365_v45 }
  0x5f   : > { %2547 = vmatmul.mubr.f32.gmra.mrb[4].mxu1 %v3362_v44  ;;  %2499 = vmatmul.mubr.f32.gmra.mrb[4].mxu0 %v3378_v50 }
  0x60   : > { %2549 = vmatprep.mubr.f32.mxu1 %v3368_v46  ;;  %2857 = vmatpush3.bf16.msra.mxu1 %v2854_v40  ;;  %v3540_v40 = vld [vmem:[%s3247_s14 + $0xb8] sm:$0xff] }
  0x61   : > { %2859 = vmatprep.subr.bf16.mxu1 %v2858_v47  ;;  %2501 = vmatprep.mubr.f32.mxu0 %v3387_v52 }
  0x63   : > { %2550 = vmatmul.mubr.f32.gmra.mrb[6].mxu1 %v3384_v51  ;;  %2502 = vmatmul.mubr.f32.gmra.mrb[6].mxu0 %v3400_v57 }
  0x64   : > { %2552 = vmatprep.mubr.f32.mxu1 %v3390_v53  ;;  %2861 = vmatpush3.bf16.msra.mxu1 %v2858_v47  ;;  %v3553_v47 = vld [vmem:[%s3247_s14 + $0x1d0] sm:$0xff] }
  0x65   : > { %2863 = vmatprep.subr.bf16.mxu1 %v2862_v54  ;;  %2504 = vmatprep.mubr.f32.mxu0 %v3409_v59 }
  0x67   : > { %2553 = vmatmul.mubr.f32.gmra.mrb[8].mxu1 %v3406_v58  ;;  %2505 = vmatmul.mubr.f32.gmra.mrb[8].mxu0 %v3422_v0 }
  0x68   : > { %2555 = vmatprep.mubr.f32.mxu1 %v3412_v60  ;;  %2865 = vmatpush3.bf16.msra.mxu1 %v2862_v54  ;;  %v3565_v54 = vld [vmem:[%s3247_s14 + $0x1d8] sm:$0xff] }
  0x69   : > { %2867 = vmatprep.subr.bf16.mxu1 %v2866_v61  ;;  %2507 = vmatprep.mubr.f32.mxu0 %v3431_v2  ;;  %4223 = vst [vmem:[#allocation5_spill] sm:$0xff] %v3565_v54 }
  0x6b   : > { %2556 = vmatmul.mubr.f32.gmra.mrb[10].mxu1 %v3428_v1  ;;  %2508 = vmatmul.mubr.f32.gmra.mrb[10].mxu0 %v3444_v7 }
  0x6c   : > { %2558 = vmatprep.mubr.f32.mxu1 %v3434_v3  ;;  %2869 = vmatpush3.bf16.msra.mxu1 %v2866_v61  ;;  %v3576_v61 = vld [vmem:[%s3247_s14 + $0xe0] sm:$0xff] }
  0x6d   : > { %2871 = vmatprep.subr.bf16.mxu1 %v2870_v4  ;;  %2510 = vmatprep.mubr.f32.mxu0 %v3453_v10 }
  0x6f   : > { %2559 = vmatmul.mubr.f32.gmra.mrb[12].mxu1 %v3450_v8  ;;  %2511 = vmatmul.mubr.f32.gmra.mrb[12].mxu0 %v3460_v13 }
  0x70   : > { %2561 = vmatprep.mubr.f32.mxu1 %v3456_v11  ;;  %2873 = vmatpush3.bf16.msra.mxu1 %v2870_v4  ;;  %v3588_v4 = vld [vmem:[%s3247_s14 + $0xe8] sm:$0xff] }
  0x71   : > { %2875 = vmatprep.subr.bf16.mxu1 %v2874_v12  ;;  %2513 = vmatprep.mubr.f32.mxu0 %v3469_v15 }
  0x73   : > { %2562 = vmatmul.mubr.f32.gmra.mrb[14].mxu1 %v3466_v14  ;;  %2514 = vmatmul.mubr.f32.gmra.mrb[14].mxu0 %v3476_v17 }
  0x74   : > { %2564 = vmatprep.mubr.f32.mxu1 %v3472_v16  ;;  %2877 = vmatpush3.bf16.msra.mxu1 %v2874_v12  ;;  %v712_v12 = vmul.f32 %v3300_v22, %v3300_v22  ;;  %v716_v22 = vmul.f32 %v3365_v45, %v3365_v45  ;;  %v721_v45 = vmul.f32 %v3422_v0, %v3422_v0 }
  0x75   : > { %2516 = vmatprep.mubr.f32.mxu0 %v3485_v19  ;;  %v726_v0 = vmul.f32 %v3469_v15, %v3469_v15  ;;  %v731_v15 = vmul.f32 %v3508_v26, %v3508_v26 }
  0x77   : > { %2565 = vmatmul.mubr.f32.gmra.mrb[16].mxu1 %v3482_v18  ;;  %2517 = vmatmul.mubr.f32.gmra.mrb[16].mxu0 %v3492_v21 }
  0x78   : > { %2567 = vmatprep.mubr.f32.mxu1 %v3488_v20  ;;  %2519 = vmatprep.mubr.f32.mxu0 %v3496_v23 }
  0x7b   : > { %2568 = vmatmul.mubr.f32.gmra.mrb[18].mxu1 %v3501_v24  ;;  %2520 = vmatmul.mubr.f32.gmra.mrb[18].mxu0 %v3508_v26  ;;  %v735_v26 = vmul.f32 %v3540_v40, %v3540_v40 }
  0x7c   : > { %2570 = vmatprep.mubr.f32.mxu1 %v3505_v25  ;;  %2522 = vmatprep.mubr.f32.mxu0 %v3512_v27 }
  0x7f   : > { %2571 = vmatmul.mubr.f32.gmra.mrb[20].mxu1 %v3517_v28  ;;  %2523 = vmatmul.mubr.f32.gmra.mrb[20].mxu0 %v3524_v30 }
  0x80   : > { %2573 = vmatprep.mubr.f32.mxu1 %v3521_v29  ;;  %2525 = vmatprep.mubr.f32.mxu0 %v3528_v33 }
  0x83   : > { %2574 = vmatmul.mubr.f32.gmra.mrb[22].mxu1 %v3533_v34  ;;  %2526 = vmatmul.mubr.f32.gmra.mrb[22].mxu0 %v3540_v40  ;;  %v740_v40 = vmul.f32 %v3576_v61, %v3576_v61 }
  0x84   : > { %2576 = vmatprep.mubr.f32.mxu1 %v3537_v35  ;;  %2528 = vmatprep.mubr.f32.mxu0 %v3544_v41 }
  0x87   : > { %2577 = vmatmul.mubr.f32.gmra.mrb[24].mxu1 %v3549_v42  ;;  %2529 = vmatmul.mubr.f32.gmra.mrb[24].mxu0 %v3556_v48 }
  0x88   : > { %2579 = vmatprep.mubr.f32.mxu1 %v3553_v47  ;;  %2531 = vmatprep.mubr.f32.mxu0 %v3560_v49 }
  0x8b   : > { %2580 = vmatmul.mubr.f32.gmra.mrb[26].mxu1 %v3565_v54  ;;  %2532 = vmatmul.mubr.f32.gmra.mrb[26].mxu0 %v3572_v56  ;;  %v715_v54 = vmul.f32 %v3356_v43, %v3356_v43  ;;  %v720_v43 = vmul.f32 %v3409_v59, %v3409_v59  ;;  %v725_v59 = vmul.f32 %v3460_v13, %v3460_v13 }
  0x8c   : > { %2582 = vmatprep.mubr.f32.mxu1 %v3569_v55  ;;  %2534 = vmatprep.mubr.f32.mxu0 %v3576_v61  ;;  %v3603_v55 = vld [vmem:[%s3247_s14 + $0xf8] sm:$0xff]  ;;  %v730_v13 = vmul.f32 %v3496_v23, %v3496_v23  ;;  %v734_v23 = vmul.f32 %v3528_v33, %v3528_v33  ;;  %v739_v33 = vmul.f32 %v3572_v56, %v3572_v56 }
  0x8d   : > { %v745_v56 = vmul.f32 %v3322_v31, %v3322_v31  ;;  %v746_v61 = vmul.f32 %v3325_v32, %v3325_v32  ;;  %v750_v31 = vmul.f32 %v3368_v46, %v3368_v46  ;;  %v751_v32 = vmul.f32 %v3384_v51, %v3384_v51 }
  0x8e   : > { %v755_v46 = vmul.f32 %v3428_v1, %v3428_v1  ;;  %v756_v51 = vmul.f32 %v3434_v3, %v3434_v3  ;;  %v760_v1 = vmul.f32 %v3472_v16, %v3472_v16  ;;  %v761_v3 = vmul.f32 %v3482_v18, %v3482_v18 }
  0x8f   : > { %2583 = vmatmul.mubr.f32.gmra.mrb[28].mxu1 %v3581_v62  ;;  %2535 = vmatmul.mubr.f32.gmra.mrb[28].mxu0 %v3588_v4  ;;  %v713_v62 = vmul.f32 %v3334_v36, %v3334_v36  ;;  %v718_v36 = vmul.f32 %v3387_v52, %v3387_v52  ;;  %v723_v52 = vmul.f32 %v3444_v7, %v3444_v7 }
  0x90   : > { %2585 = vmatprep.mubr.f32.mxu1 %v3585_v63  ;;  %2537 = vmatprep.mubr.f32.mxu0 %v3592_v5  ;;  %v714_v63 = vmul.f32 %v3343_v38, %v3343_v38  ;;  %v719_v38 = vmul.f32 %v3400_v57, %v3400_v57  ;;  %v724_v57 = vmul.f32 %v3453_v10, %v3453_v10 }
  0x91   : > { %v728_v7 = vmul.f32 %v3485_v19, %v3485_v19  ;;  %v729_v10 = vmul.f32 %v3492_v21, %v3492_v21  ;;  %v1305_v19 = vld [vmem:[%s4213_s4] sm:$0xf]  ;;  %v733_v21 = vmul.f32 %v3524_v30, %v3524_v30  ;;  %v738_v30 = vmul.f32 %v3560_v49, %v3560_v49 }
  0x92   : > { %2716 = vmatprep.subr.msk.mxu0 %vm1499_vm0, %v1305_v19  ;;  %v743_v49 = vmul.f32 %v3603_v55, %v3603_v55  ;;  %v765_v16 = vmul.f32 %v3517_v28, %v3517_v28  ;;  %v766_v18 = vmul.f32 %v3521_v29, %v3521_v29  ;;  %v770_v28 = vmul.f32 %v3553_v47, %v3553_v47 }
  0x93   : > { %2586 = vmatmul.mubr.f32.gmra.mrb[30].mxu1 %v3597_v6  ;;  %2538 = vmatmul.mubr.f32.gmra.mrb[30].mxu0 %v3603_v55  ;;  %v717_v6 = vmul.f32 %v3378_v50, %v3378_v50  ;;  %v722_v50 = vmul.f32 %v3431_v2, %v3431_v2  ;;  %v727_v2 = vmul.f32 %v3476_v17, %v3476_v17  ;;  %v4228_v55 = vld [vmem:[#allocation5_spill] sm:$0xff] }
  0x94   : > { %2620 = vmatprep.mubr.f32.mxu1 %v712_v12  ;;  %v732_v17 = vmul.f32 %v3512_v27, %v3512_v27  ;;  %2717 = vmatpush3.msk.msra.mxu0 %vm1499_vm0, %v1305_v19  ;;  %v736_v27 = vmul.f32 %v3544_v41, %v3544_v41  ;;  %v741_v41 = vmul.f32 %v3588_v4, %v3588_v4  ;;  %v4231_v12 = vld [vmem:[#allocation8_spill] sm:$0xff] }
  0x95   : > { %v748_v4 = vmul.f32 %v3346_v39, %v3346_v39  ;;  %v753_v39 = vmul.f32 %v3406_v58, %v3406_v58  ;;  %v758_v58 = vmul.f32 %v3456_v11, %v3456_v11  ;;  %v763_v11 = vmul.f32 %v3501_v24, %v3501_v24 }
  0x96   : > { %v768_v24 = vmul.f32 %v3537_v35, %v3537_v35  ;;  %v771_v29 = vmul.f32 %v4228_v55, %v4228_v55 }
  0x97   : > { %2621 = vmatmul.mubr.f32.vlgmr.msra.gmra.mrb[32].mxu1 %v713_v62  ;;  %v744_v62 = vmul.f32 %v3272_v9, %v3272_v9  ;;  %v749_v9 = vmul.f32 %v3362_v44, %v3362_v44  ;;  %v754_v44 = vmul.f32 %v3412_v60, %v3412_v60  ;;  %v759_v60 = vmul.f32 %v3466_v14, %v3466_v14 }
  0x98   : > { %2623 = vmatprep.mubr.f32.mxu1 %v714_v63  ;;  %v747_v63 = vmul.f32 %v3340_v37, %v3340_v37  ;;  %v752_v37 = vmul.f32 %v3390_v53, %v3390_v53  ;;  %v757_v53 = vmul.f32 %v3450_v8, %v3450_v8  ;;  %v762_v8 = vmul.f32 %v3488_v20, %v3488_v20 }
  0x99   : > { %v764_v14 = vmul.f32 %v3505_v25, %v3505_v25  ;;  %v767_v20 = vmul.f32 %v3533_v34, %v3533_v34  ;;  %v769_v25 = vmul.f32 %v3549_v42, %v3549_v42  ;;  %v774_v42 = vmul.f32 %v4231_v12, %v4231_v12 }
  0x9b   : > { %2624 = vmatmul.mubr.f32.gmra.mrb[34].mxu1 %v715_v54  ;;  %v737_v54 = vmul.f32 %v3556_v48, %v3556_v48  ;;  %v742_v48 = vmul.f32 %v3592_v5, %v3592_v5  ;;  %v4229_v5 = vld [vmem:[#allocation6_spill] sm:$0xff] }
  0x9c   : > { %2626 = vmatprep.mubr.f32.mxu1 %v716_v22  ;;  %v772_v34 = vmul.f32 %v4229_v5, %v4229_v5  ;;  %v4232_v22 = vld [vmem:[#allocation9_spill] sm:$0xff] }
  0x9d   : > { %v775_v47 = vmul.f32 %v4232_v22, %v4232_v22 }
  0x9f   : > { %2627 = vmatmul.mubr.f32.gmra.mrb[36].mxu1 %v717_v6  ;;  %v4230_v6 = vld [vmem:[#allocation7_spill] sm:$0xff] }
  0xa0   : > { %2629 = vmatprep.mubr.f32.mxu1 %v718_v36  ;;  %v773_v35 = vmul.f32 %v4230_v6, %v4230_v6 }
  0xa3   : > { %2630 = vmatmul.mubr.f32.gmra.mrb[38].mxu1 %v719_v38 }
  0xa4   : > { %2632 = vmatprep.mubr.f32.mxu1 %v720_v43 }
  0xa7   : > { %2633 = vmatmul.mubr.f32.gmra.mrb[40].mxu1 %v721_v45 }
  0xa8   : > { %2635 = vmatprep.mubr.f32.mxu1 %v722_v50 }
  0xab   : > { %2636 = vmatmul.mubr.f32.gmra.mrb[42].mxu1 %v723_v52 }
  0xac   : > { %2638 = vmatprep.mubr.f32.mxu1 %v724_v57 }
  0xaf   : > { %2639 = vmatmul.mubr.f32.gmra.mrb[44].mxu1 %v725_v59 }
  0xb0   : > { %2641 = vmatprep.mubr.f32.mxu1 %v726_v0 }
  0xb3   : > { %2642 = vmatmul.mubr.f32.gmra.mrb[46].mxu1 %v727_v2 }
  0xb4   : > { %2644 = vmatprep.mubr.f32.mxu1 %v728_v7 }
  0xb7   : > { %2645 = vmatmul.mubr.f32.gmra.mrb[48].mxu1 %v729_v10 }
  0xb8   : > { %2647 = vmatprep.mubr.f32.mxu1 %v730_v13 }
  0xbb   : > { %2648 = vmatmul.mubr.f32.gmra.mrb[50].mxu1 %v731_v15 }
  0xbc   : > { %2650 = vmatprep.mubr.f32.mxu1 %v732_v17 }
  0xbf   : > { %2651 = vmatmul.mubr.f32.gmra.mrb[52].mxu1 %v733_v21 }
  0xc0   : > { %2653 = vmatprep.mubr.f32.mxu1 %v734_v23 }
  0xc3   : > { %2654 = vmatmul.mubr.f32.gmra.mrb[54].mxu1 %v735_v26 }
  0xc4   : > { %2656 = vmatprep.mubr.f32.mxu1 %v736_v27 }
  0xc7   : > { %2657 = vmatmul.mubr.f32.gmra.mrb[56].mxu1 %v737_v54 }
  0xc8   : > { %2659 = vmatprep.mubr.f32.mxu1 %v738_v30 }
  0xcb   : > { %2660 = vmatmul.mubr.f32.gmra.mrb[58].mxu1 %v739_v33 }
  0xcc   : > { %2662 = vmatprep.mubr.f32.mxu1 %v740_v40 }
  0xcf   : > { %2663 = vmatmul.mubr.f32.gmra.mrb[60].mxu1 %v741_v41 }
  0xd0   : > { %2665 = vmatprep.mubr.f32.mxu1 %v742_v48 }
  0xd3   : > { %2666 = vmatmul.mubr.f32.gmra.mrb[62].mxu1 %v743_v49 }
  0xd4   : > { %2668 = vmatprep.mubr.f32.mxu1 %v744_v62 }
  0xd7   : > { %2669 = vmatmul.mubr.f32.gmra.mrb[64].mxu1 %v745_v56 }
  0xd8   : > { %2671 = vmatprep.mubr.f32.mxu1 %v746_v61 }
  0xdb   : > { %2672 = vmatmul.mubr.f32.gmra.mrb[66].mxu1 %v747_v63 }
  0xdc   : > { %2674 = vmatprep.mubr.f32.mxu1 %v748_v4 }
  0xdf   : > { %2675 = vmatmul.mubr.f32.gmra.mrb[68].mxu1 %v749_v9 }
  0xe0   : > { %2677 = vmatprep.mubr.f32.mxu1 %v750_v31 }
  0xe3   : > { %2678 = vmatmul.mubr.f32.gmra.mrb[70].mxu1 %v751_v32 }
  0xe4   : > { %2680 = vmatprep.mubr.f32.mxu1 %v752_v37 }
  0xe7   : > { %2681 = vmatmul.mubr.f32.gmra.mrb[72].mxu1 %v753_v39 }
  0xe8   : > { %2683 = vmatprep.mubr.f32.mxu1 %v754_v44 }
  0xeb   : > { %2684 = vmatmul.mubr.f32.gmra.mrb[74].mxu1 %v755_v46 }
  0xec   : > { %2686 = vmatprep.mubr.f32.mxu1 %v756_v51 }
  0xef   : > { %2687 = vmatmul.mubr.f32.gmra.mrb[76].mxu1 %v757_v53 }
  0xf0   : > { %2689 = vmatprep.mubr.f32.mxu1 %v758_v58 }
  0xf3   : > { %2690 = vmatmul.mubr.f32.gmra.mrb[78].mxu1 %v759_v60 }
  0xf4   : > { %2692 = vmatprep.mubr.f32.mxu1 %v760_v1 }
  0xf7   : > { %2693 = vmatmul.mubr.f32.gmra.mrb[80].mxu1 %v761_v3 }
  0xf8   : > { %2695 = vmatprep.mubr.f32.mxu1 %v762_v8 }
  0xfb   : > { %2696 = vmatmul.mubr.f32.gmra.mrb[82].mxu1 %v763_v11 }
  0xfc   : > { %2698 = vmatprep.mubr.f32.mxu1 %v764_v14 }
  0xff   : > { %2699 = vmatmul.mubr.f32.gmra.mrb[84].mxu1 %v765_v16 }
 0x100   : > { %2701 = vmatprep.mubr.f32.mxu1 %v766_v18 }
 0x103   : > { %2702 = vmatmul.mubr.f32.gmra.mrb[86].mxu1 %v767_v20 }
 0x104   : > { %2704 = vmatprep.mubr.f32.mxu1 %v768_v24 }
 0x107   : > { %2705 = vmatmul.mubr.f32.gmra.mrb[88].mxu1 %v769_v25 }
 0x108   : > { %2707 = vmatprep.mubr.f32.mxu1 %v770_v28 }
 0x10b   : > { %2708 = vmatmul.mubr.f32.gmra.mrb[90].mxu1 %v771_v29 }
 0x10c   : > { %2710 = vmatprep.mubr.f32.mxu1 %v772_v34 }
 0x10f   : > { %2711 = vmatmul.mubr.f32.gmra.mrb[92].mxu1 %v773_v35 }
 0x110   : > { %2713 = vmatprep.mubr.f32.mxu1 %v774_v42 }
 0x113   : > { %2714 = vmatmul.mubr.f32.gmra.mrb[94].mxu1 %v775_v47 }
 0x12a   : > { %v3736_v36 = vpop.f32.mrb[0].mxu1  ;;  %v3800_v8 = vpop.f32.mrb[0].mxu0 }
 0x12b   : > { %v3738_v38 = vpop.f32.mrb[1].mxu1  ;;  %v3802_v16 = vpop.f32.mrb[1].mxu0 }
 0x12e   : > { %v3740_v43 = vpop.f32.mrb[2].mxu1  ;;  %v3804_v24 = vpop.f32.mrb[2].mxu0 }
 0x12f   : > { %v3742_v45 = vpop.f32.mrb[3].mxu1  ;;  %v3807_v28 = vpop.f32.mrb[3].mxu0 }
 0x132   : > { %v3744_v50 = vpop.f32.mrb[4].mxu1  ;;  %v3810_v29 = vpop.f32.mrb[4].mxu0 }
 0x133   : > { %v3746_v52 = vpop.f32.mrb[5].mxu1  ;;  %v3812_v6 = vpop.f32.mrb[5].mxu0 }
 0x136   : > { %v3748_v57 = vpop.f32.mrb[6].mxu1  ;;  %v3814_v42 = vpop.f32.mrb[6].mxu0 }
 0x137   : > { %v3750_v59 = vpop.f32.mrb[7].mxu1  ;;  %v3817_v47 = vpop.f32.mrb[7].mxu0 }
 0x13a   : > { %v3752_v0 = vpop.f32.mrb[8].mxu1 }
 0x13b   : > { %v3754_v2 = vpop.f32.mrb[9].mxu1 }
 0x13e   : > { %v3756_v7 = vpop.f32.mrb[10].mxu1 }
 0x13f   : > { %v3758_v10 = vpop.f32.mrb[11].mxu1 }
 0x142   : > { %v3760_v13 = vpop.f32.mrb[12].mxu1 }
 0x143   : > { %v3762_v15 = vpop.f32.mrb[13].mxu1 }
 0x146   : > { %v3764_v17 = vpop.f32.mrb[14].mxu1 }
 0x147   : > { %v3766_v19 = vpop.f32.mrb[15].mxu1 }
 0x14a   : > { %v3768_v21 = vpop.f32.mrb[16].mxu1 }
 0x14b   : > { %v3770_v23 = vpop.f32.mrb[17].mxu1 }
 0x14e   : > { %v3772_v26 = vpop.f32.mrb[18].mxu1 }
 0x14f   : > { %4233 = vst [vmem:[#allocation5_spill] sm:$0xff] %v3772_v26  ;;  %v3774_v27 = vpop.f32.mrb[19].mxu1 }
 0x150   : > { %4234 = vst [vmem:[#allocation6_spill] sm:$0xff] %v3774_v27 }
 0x152   : > { %v3776_v54 = vpop.f32.mrb[20].mxu1 }
 0x153   : > { %4235 = vst [vmem:[#allocation7_spill] sm:$0xff] %v3776_v54  ;;  %v3778_v30 = vpop.f32.mrb[21].mxu1 }
 0x154   : > { %4236 = vst [vmem:[#allocation8_spill] sm:$0xff] %v3778_v30 }
 0x156   : > { %v3780_v33 = vpop.f32.mrb[22].mxu1 }
 0x157   : > { %4237 = vst [vmem:[#allocation9_spill] sm:$0xff] %v3780_v33  ;;  %v3782_v40 = vpop.f32.mrb[23].mxu1 }
 0x158   : > { %4238 = vst [vmem:[#allocation10_spill] sm:$0xff] %v3782_v40 }
 0x15a   : > { %v3784_v41 = vpop.f32.mrb[24].mxu1 }
 0x15b   : > { %4239 = vst [vmem:[#allocation11_spill] sm:$0xff] %v3784_v41  ;;  %v3786_v48 = vpop.f32.mrb[25].mxu1 }
 0x15c   : > { %4240 = vst [vmem:[#allocation12_spill] sm:$0xff] %v3786_v48 }
 0x15e   : > { %v3788_v49 = vpop.f32.mrb[26].mxu1 }
 0x15f   : > { %4241 = vst [vmem:[#allocation13_spill] sm:$0xff] %v3788_v49  ;;  %v3790_v62 = vpop.f32.mrb[27].mxu1 }
 0x160   : > { %4242 = vst [vmem:[#allocation14_spill] sm:$0xff] %v3790_v62 }
 0x162   : > { %v3792_v56 = vpop.f32.mrb[28].mxu1 }
 0x163   : > { %4243 = vst [vmem:[#allocation15_spill] sm:$0xff] %v3792_v56  ;;  %v3794_v61 = vpop.f32.mrb[29].mxu1 }
 0x164   : > { %4244 = vst [vmem:[#allocation16_spill] sm:$0xff] %v3794_v61 }
 0x166   : > { %v3796_v63 = vpop.f32.mrb[30].mxu1 }
 0x167   : > { %4245 = vst [vmem:[#allocation17_spill] sm:$0xff] %v3796_v63  ;;  %v3798_v4 = vpop.f32.mrb[31].mxu1 }
 0x168   : > { %4246 = vst [vmem:[#allocation18_spill] sm:$0xff] %v3798_v4 }
 0x16a   : > { %v2622_v9 = vpop.f32.mrb[32].mxu1 }
 0x16b   : > { %v1178_v31 = vmax.f32 %v2622_v9, 1e-24  ;;  %v858_v32 = vpop.f32.mrb[33].mxu1 }
 0x16c   : > { %v1177_v37 = vmax.f32 %v858_v32, 1e-24 }
 0x16e   : > { %2935 = vrsqrt.f32 %v1177_v37  ;;  %v2625_v39 = vpop.f32.mrb[34].mxu1 }
 0x16f   : > { %2937 = vrsqrt.f32 %v1178_v31  ;;  %v1180_v44 = vmax.f32 %v2625_v39, 1e-24  ;;  %v868_v46 = vpop.f32.mrb[35].mxu1  ;;  %v3820_v31 = vpop.f32.mrb[8].mxu0 }
 0x170   : > { %v1179_v51 = vmax.f32 %v868_v46, 1e-24  ;;  %v3822_v39 = vpop.f32.mrb[9].mxu0 }
 0x172   : > { %2939 = vrsqrt.f32 %v1179_v51  ;;  %v2628_v53 = vpop.f32.mrb[36].mxu1  ;;  %v3824_v51 = vpop.f32.mrb[10].mxu0 }
 0x173   : > { %2941 = vrsqrt.f32 %v1180_v44  ;;  %v1182_v58 = vmax.f32 %v2628_v53, 1e-24  ;;  %v878_v60 = vpop.f32.mrb[37].mxu1 }
 0x174   : > { %v1181_v1 = vmax.f32 %v878_v60, 1e-24 }
 0x176   : > { %2943 = vrsqrt.f32 %v1181_v1  ;;  %v2631_v3 = vpop.f32.mrb[38].mxu1 }
 0x177   : > { %2945 = vrsqrt.f32 %v1182_v58  ;;  %v1184_v11 = vmax.f32 %v2631_v3, 1e-24  ;;  %v888_v14 = vpop.f32.mrb[39].mxu1  ;;  %v3827_v58 = vpop.f32.mrb[11].mxu0 }
 0x178   : > { %v2936_v18 = vpop.eup %2935  ;;  %v1183_v20 = vmax.f32 %v888_v14, 1e-24  ;;  %v3830_v1 = vpop.f32.mrb[12].mxu0 }
 0x179   : > { %v2938_v25 = vpop.eup %2937  ;;  %2718 = vmatprep.mubr.msk.f32.mxu0 %vm1306_vm1, %v2936_v18  ;;  %v3832_v14 = vpop.f32.mrb[13].mxu0 }
 0x17a   : > { %2947 = vrsqrt.f32 %v1183_v20  ;;  %v2634_v55 = vpop.f32.mrb[40].mxu1  ;;  %2719 = vmatmul.mubr.msk.f32.vlgmr.msra.gmra.mrb[32].mxu0 %vm1306_vm1, %v2938_v25  ;;  %v3834_v25 = vpop.f32.mrb[14].mxu0 }
 0x17b   : > { %2949 = vrsqrt.f32 %v1184_v11  ;;  %v1186_v5 = vmax.f32 %v2634_v55, 1e-24  ;;  %v898_v34 = vpop.f32.mrb[41].mxu1 }
 0x17c   : > { %v2940_v35 = vpop.eup %2939  ;;  %v1185_v12 = vmax.f32 %v898_v34, 1e-24 }
 0x17d   : > { %v2942_v22 = vpop.eup %2941  ;;  %2721 = vmatprep.mubr.msk.f32.mxu0 %vm1306_vm1, %v2940_v35 }
 0x17e   : > { %2951 = vrsqrt.f32 %v1185_v12  ;;  %v2637_v9 = vpop.f32.mrb[42].mxu1  ;;  %2722 = vmatmul.mubr.msk.f32.gmra.mrb[34].mxu0 %vm1306_vm1, %v2942_v22 }
 0x17f   : > { %2953 = vrsqrt.f32 %v1186_v5  ;;  %v1188_v32 = vmax.f32 %v2637_v9, 1e-24  ;;  %v908_v37 = vpop.f32.mrb[43].mxu1  ;;  %v3837_v5 = vpop.f32.mrb[15].mxu0 }
 0x180   : > { %v2944_v44 = vpop.eup %2943  ;;  %v1187_v46 = vmax.f32 %v908_v37, 1e-24  ;;  %v3840_v35 = vpop.f32.mrb[16].mxu0 }
 0x181   : > { %v2946_v53 = vpop.eup %2945  ;;  %2724 = vmatprep.mubr.msk.f32.mxu0 %vm1306_vm1, %v2944_v44  ;;  %v3842_v9 = vpop.f32.mrb[17].mxu0 }
 0x182   : > { %2955 = vrsqrt.f32 %v1187_v46  ;;  %v2640_v60 = vpop.f32.mrb[44].mxu1  ;;  %2725 = vmatmul.mubr.msk.f32.gmra.mrb[36].mxu0 %vm1306_vm1, %v2946_v53  ;;  %v3844_v44 = vpop.f32.mrb[18].mxu0 }
 0x183   : > { %2957 = vrsqrt.f32 %v1188_v32  ;;  %v1190_v3 = vmax.f32 %v2640_v60, 1e-24  ;;  %v918_v11 = vpop.f32.mrb[45].mxu1  ;;  %v3847_v53 = vpop.f32.mrb[19].mxu0 }
 0x184   : > { %v2948_v18 = vpop.eup %2947  ;;  %v1189_v20 = vmax.f32 %v918_v11, 1e-24  ;;  %v3850_v11 = vpop.f32.mrb[20].mxu0 }
 0x185   : > { %v2950_v55 = vpop.eup %2949  ;;  %2727 = vmatprep.mubr.msk.f32.mxu0 %vm1306_vm1, %v2948_v18 }
 0x186   : > { %2959 = vrsqrt.f32 %v1189_v20  ;;  %v2643_v34 = vpop.f32.mrb[46].mxu1  ;;  %2728 = vmatmul.mubr.msk.f32.gmra.mrb[38].mxu0 %vm1306_vm1, %v2950_v55  ;;  %v3852_v20 = vpop.f32.mrb[21].mxu0 }
 0x187   : > { %2961 = vrsqrt.f32 %v1190_v3  ;;  %v1192_v12 = vmax.f32 %v2643_v34, 1e-24  ;;  %v928_v22 = vpop.f32.mrb[47].mxu1 }
 0x188   : > { %v2952_v32 = vpop.eup %2951  ;;  %v1191_v37 = vmax.f32 %v928_v22, 1e-24  ;;  %v3854_v22 = vpop.f32.mrb[22].mxu0 }
 0x189   : > { %v2954_v46 = vpop.eup %2953  ;;  %2730 = vmatprep.mubr.msk.f32.mxu0 %vm1306_vm1, %v2952_v32  ;;  %v3857_v32 = vpop.f32.mrb[23].mxu0 }
 0x18a   : > { %2963 = vrsqrt.f32 %v1191_v37  ;;  %v2646_v60 = vpop.f32.mrb[48].mxu1  ;;  %2731 = vmatmul.mubr.msk.f32.gmra.mrb[40].mxu0 %vm1306_vm1, %v2954_v46  ;;  %v3860_v46 = vpop.f32.mrb[24].mxu0 }
 0x18b   : > { %2965 = vrsqrt.f32 %v1192_v12  ;;  %v1194_v3 = vmax.f32 %v2646_v60, 1e-24  ;;  %v938_v18 = vpop.f32.mrb[49].mxu1  ;;  %v3862_v63 = vpop.f32.mrb[25].mxu0 }
 0x18c   : > { %v2956_v55 = vpop.eup %2955  ;;  %v1193_v34 = vmax.f32 %v938_v18, 1e-24  ;;  %v3864_v56 = vpop.f32.mrb[26].mxu0 }
 0x18d   : > { %v2958_v4 = vpop.eup %2957  ;;  %2733 = vmatprep.mubr.msk.f32.mxu0 %vm1306_vm1, %v2956_v55  ;;  %v3867_v55 = vpop.f32.mrb[27].mxu0 }
 0x18e   : > { %2967 = vrsqrt.f32 %v1193_v34  ;;  %v2649_v37 = vpop.f32.mrb[50].mxu1  ;;  %2734 = vmatmul.mubr.msk.f32.gmra.mrb[42].mxu0 %vm1306_vm1, %v2958_v4  ;;  %v3870_v4 = vpop.f32.mrb[28].mxu0 }
 0x18f   : > { %2969 = vrsqrt.f32 %v1194_v3  ;;  %v1196_v12 = vmax.f32 %v2649_v37, 1e-24  ;;  %v948_v60 = vpop.f32.mrb[51].mxu1  ;;  %v3872_v49 = vpop.f32.mrb[29].mxu0 }
 0x190   : > { %v2960_v61 = vpop.eup %2959  ;;  %v1195_v18 = vmax.f32 %v948_v60, 1e-24  ;;  %v3874_v41 = vpop.f32.mrb[30].mxu0 }
 0x191   : > { %v2962_v62 = vpop.eup %2961  ;;  %2736 = vmatprep.mubr.msk.f32.mxu0 %vm1306_vm1, %v2960_v61  ;;  %v3877_v61 = vpop.f32.mrb[31].mxu0 }
 0x192   : > { %2971 = vrsqrt.f32 %v1195_v18  ;;  %v2652_v34 = vpop.f32.mrb[52].mxu1  ;;  %2737 = vmatmul.mubr.msk.f32.gmra.mrb[44].mxu0 %vm1306_vm1, %v2962_v62 }
 0x193   : > { %2973 = vrsqrt.f32 %v1196_v12  ;;  %v1198_v3 = vmax.f32 %v2652_v34, 1e-24  ;;  %v958_v37 = vpop.f32.mrb[53].mxu1 }
 0x194   : > { %v2964_v48 = vpop.eup %2963  ;;  %v1197_v60 = vmax.f32 %v958_v37, 1e-24 }
 0x195   : > { %v2966_v40 = vpop.eup %2965  ;;  %2739 = vmatprep.mubr.msk.f32.mxu0 %vm1306_vm1, %v2964_v48 }
 0x196   : > { %2975 = vrsqrt.f32 %v1197_v60  ;;  %v2655_v18 = vpop.f32.mrb[54].mxu1  ;;  %2740 = vmatmul.mubr.msk.f32.gmra.mrb[46].mxu0 %vm1306_vm1, %v2966_v40 }
 0x197   : > { %2977 = vrsqrt.f32 %v1198_v3  ;;  %v1200_v62 = vmax.f32 %v2655_v18, 1e-24  ;;  %v968_v12 = vpop.f32.mrb[55].mxu1 }
 0x198   : > { %v2968_v34 = vpop.eup %2967  ;;  %v1199_v33 = vmax.f32 %v968_v12, 1e-24 }
 0x199   : > { %v2970_v30 = vpop.eup %2969  ;;  %2742 = vmatprep.mubr.msk.f32.mxu0 %vm1306_vm1, %v2968_v34 }
 0x19a   : > { %2979 = vrsqrt.f32 %v1199_v33  ;;  %v2658_v37 = vpop.f32.mrb[56].mxu1  ;;  %2743 = vmatmul.mubr.msk.f32.gmra.mrb[48].mxu0 %vm1306_vm1, %v2970_v30 }
 0x19b   : > { %2981 = vrsqrt.f32 %v1200_v62  ;;  %v1202_v48 = vmax.f32 %v2658_v37, 1e-24  ;;  %v978_v54 = vpop.f32.mrb[57].mxu1 }
 0x19c   : > { %v2972_v27 = vpop.eup %2971  ;;  %v1201_v60 = vmax.f32 %v978_v54, 1e-24 }
 0x19d   : > { %v2974_v26 = vpop.eup %2973  ;;  %2745 = vmatprep.mubr.msk.f32.mxu0 %vm1306_vm1, %v2972_v27 }
 0x19e   : > { %2983 = vrsqrt.f32 %v1201_v60  ;;  %v2661_v40 = vpop.f32.mrb[58].mxu1  ;;  %2746 = vmatmul.mubr.msk.f32.gmra.mrb[50].mxu0 %vm1306_vm1, %v2974_v26 }
 0x19f   : > { %2985 = vrsqrt.f32 %v1202_v48  ;;  %v1204_v3 = vmax.f32 %v2661_v40, 1e-24  ;;  %v988_v18 = vpop.f32.mrb[59].mxu1 }
 0x1a0   : > { %v2976_v12 = vpop.eup %2975  ;;  %v1203_v33 = vmax.f32 %v988_v18, 1e-24 }
 0x1a1   : > { %v2978_v34 = vpop.eup %2977  ;;  %2748 = vmatprep.mubr.msk.f32.mxu0 %vm1306_vm1, %v2976_v12 }
 0x1a2   : > { %2987 = vrsqrt.f32 %v1203_v33  ;;  %v2664_v30 = vpop.f32.mrb[60].mxu1  ;;  %2749 = vmatmul.mubr.msk.f32.gmra.mrb[52].mxu0 %vm1306_vm1, %v2978_v34 }
 0x1a3   : > { %2989 = vrsqrt.f32 %v1204_v3  ;;  %v1206_v54 = vmax.f32 %v2664_v30, 1e-24  ;;  %v998_v62 = vpop.f32.mrb[61].mxu1 }
 0x1a4   : > { %v2980_v27 = vpop.eup %2979  ;;  %v1205_v37 = vmax.f32 %v998_v62, 1e-24 }
 0x1a5   : > { %v2982_v60 = vpop.eup %2981  ;;  %2751 = vmatprep.mubr.msk.f32.mxu0 %vm1306_vm1, %v2980_v27 }
 0x1a6   : > { %2991 = vrsqrt.f32 %v1205_v37  ;;  %v2667_v26 = vpop.f32.mrb[62].mxu1  ;;  %2752 = vmatmul.mubr.msk.f32.gmra.mrb[54].mxu0 %vm1306_vm1, %v2982_v60 }
 0x1a7   : > { %2993 = vrsqrt.f32 %v1206_v54  ;;  %v1208_v48 = vmax.f32 %v2667_v26, 1e-24  ;;  %v1008_v40 = vpop.f32.mrb[63].mxu1 }
 0x1a8   : > { %v2984_v18 = vpop.eup %2983  ;;  %v1207_v12 = vmax.f32 %v1008_v40, 1e-24 }
 0x1a9   : > { %v2986_v33 = vpop.eup %2985  ;;  %2754 = vmatprep.mubr.msk.f32.mxu0 %vm1306_vm1, %v2984_v18 }
 0x1aa   : > { %2995 = vrsqrt.f32 %v1207_v12  ;;  %v2670_v3 = vpop.f32.mrb[64].mxu1  ;;  %2755 = vmatmul.mubr.msk.f32.gmra.mrb[56].mxu0 %vm1306_vm1, %v2986_v33 }
 0x1ab   : > { %2997 = vrsqrt.f32 %v1208_v48  ;;  %v1210_v34 = vmax.f32 %v2670_v3, 1e-24  ;;  %v1018_v30 = vpop.f32.mrb[65].mxu1 }
 0x1ac   : > { %v2988_v62 = vpop.eup %2987  ;;  %v1209_v27 = vmax.f32 %v1018_v30, 1e-24 }
 0x1ad   : > { %v2990_v37 = vpop.eup %2989  ;;  %2757 = vmatprep.mubr.msk.f32.mxu0 %vm1306_vm1, %v2988_v62 }
 0x1ae   : > { %2999 = vrsqrt.f32 %v1209_v27  ;;  %v2673_v54 = vpop.f32.mrb[66].mxu1  ;;  %2758 = vmatmul.mubr.msk.f32.gmra.mrb[58].mxu0 %vm1306_vm1, %v2990_v37 }
 0x1af   : > { %3001 = vrsqrt.f32 %v1210_v34  ;;  %v1212_v60 = vmax.f32 %v2673_v54, 1e-24  ;;  %v1028_v26 = vpop.f32.mrb[67].mxu1 }
 0x1b0   : > { %v2992_v40 = vpop.eup %2991  ;;  %v1211_v18 = vmax.f32 %v1028_v26, 1e-24 }
 0x1b1   : > { %v2994_v12 = vpop.eup %2993  ;;  %2760 = vmatprep.mubr.msk.f32.mxu0 %vm1306_vm1, %v2992_v40 }
 0x1b2   : > { %3003 = vrsqrt.f32 %v1211_v18  ;;  %v2676_v48 = vpop.f32.mrb[68].mxu1  ;;  %2761 = vmatmul.mubr.msk.f32.gmra.mrb[60].mxu0 %vm1306_vm1, %v2994_v12 }
 0x1b3   : > { %3005 = vrsqrt.f32 %v1212_v60  ;;  %v1214_v33 = vmax.f32 %v2676_v48, 1e-24  ;;  %v1038_v3 = vpop.f32.mrb[69].mxu1 }
 0x1b4   : > { %v2996_v30 = vpop.eup %2995  ;;  %v1213_v62 = vmax.f32 %v1038_v3, 1e-24 }
 0x1b5   : > { %v2998_v27 = vpop.eup %2997  ;;  %2763 = vmatprep.mubr.msk.f32.mxu0 %vm1306_vm1, %v2996_v30 }
 0x1b6   : > { %3007 = vrsqrt.f32 %v1213_v62  ;;  %v2679_v34 = vpop.f32.mrb[70].mxu1  ;;  %2764 = vmatmul.mubr.msk.f32.gmra.mrb[62].mxu0 %vm1306_vm1, %v2998_v27 }
 0x1b7   : > { %3009 = vrsqrt.f32 %v1214_v33  ;;  %v1216_v37 = vmax.f32 %v2679_v34, 1e-24  ;;  %v1048_v54 = vpop.f32.mrb[71].mxu1 }
 0x1b8   : > { %v3000_v26 = vpop.eup %2999  ;;  %v1215_v40 = vmax.f32 %v1048_v54, 1e-24 }
 0x1b9   : > { %v3002_v18 = vpop.eup %3001  ;;  %2766 = vmatprep.mubr.msk.f32.mxu0 %vm1306_vm1, %v3000_v26 }
 0x1ba   : > { %3011 = vrsqrt.f32 %v1215_v40  ;;  %v2682_v60 = vpop.f32.mrb[72].mxu1  ;;  %2767 = vmatmul.mubr.msk.f32.gmra.mrb[64].mxu0 %vm1306_vm1, %v3002_v18 }
 0x1bb   : > { %3013 = vrsqrt.f32 %v1216_v37  ;;  %v1218_v12 = vmax.f32 %v2682_v60, 1e-24  ;;  %v1058_v48 = vpop.f32.mrb[73].mxu1 }
 0x1bc   : > { %v3004_v3 = vpop.eup %3003  ;;  %v1217_v30 = vmax.f32 %v1058_v48, 1e-24 }
 0x1bd   : > { %v3006_v62 = vpop.eup %3005  ;;  %2769 = vmatprep.mubr.msk.f32.mxu0 %vm1306_vm1, %v3004_v3 }
 0x1be   : > { %3015 = vrsqrt.f32 %v1217_v30  ;;  %v2685_v33 = vpop.f32.mrb[74].mxu1  ;;  %2770 = vmatmul.mubr.msk.f32.gmra.mrb[66].mxu0 %vm1306_vm1, %v3006_v62 }
 0x1bf   : > { %3017 = vrsqrt.f32 %v1218_v12  ;;  %v1220_v27 = vmax.f32 %v2685_v33, 1e-24  ;;  %v1068_v34 = vpop.f32.mrb[75].mxu1 }
 0x1c0   : > { %v3008_v54 = vpop.eup %3007  ;;  %v1219_v26 = vmax.f32 %v1068_v34, 1e-24 }
 0x1c1   : > { %v3010_v40 = vpop.eup %3009  ;;  %2772 = vmatprep.mubr.msk.f32.mxu0 %vm1306_vm1, %v3008_v54 }
 0x1c2   : > { %3019 = vrsqrt.f32 %v1219_v26  ;;  %v2688_v37 = vpop.f32.mrb[76].mxu1  ;;  %2773 = vmatmul.mubr.msk.f32.gmra.mrb[68].mxu0 %vm1306_vm1, %v3010_v40 }
 0x1c3   : > { %3021 = vrsqrt.f32 %v1220_v27  ;;  %v1222_v18 = vmax.f32 %v2688_v37, 1e-24  ;;  %v1078_v60 = vpop.f32.mrb[77].mxu1 }
 0x1c4   : > { %v3012_v48 = vpop.eup %3011  ;;  %v1221_v3 = vmax.f32 %v1078_v60, 1e-24 }
 0x1c5   : > { %v3014_v30 = vpop.eup %3013  ;;  %2775 = vmatprep.mubr.msk.f32.mxu0 %vm1306_vm1, %v3012_v48 }
 0x1c6   : > { %3023 = vrsqrt.f32 %v1221_v3  ;;  %v2691_v12 = vpop.f32.mrb[78].mxu1  ;;  %2776 = vmatmul.mubr.msk.f32.gmra.mrb[70].mxu0 %vm1306_vm1, %v3014_v30 }
 0x1c7   : > { %3025 = vrsqrt.f32 %v1222_v18  ;;  %v1224_v62 = vmax.f32 %v2691_v12, 1e-24  ;;  %v1088_v33 = vpop.f32.mrb[79].mxu1 }
 0x1c8   : > { %v3016_v34 = vpop.eup %3015  ;;  %v1223_v54 = vmax.f32 %v1088_v33, 1e-24 }
 0x1c9   : > { %v3018_v26 = vpop.eup %3017  ;;  %2778 = vmatprep.mubr.msk.f32.mxu0 %vm1306_vm1, %v3016_v34 }
 0x1ca   : > { %3027 = vrsqrt.f32 %v1223_v54  ;;  %v2694_v27 = vpop.f32.mrb[80].mxu1  ;;  %2779 = vmatmul.mubr.msk.f32.gmra.mrb[72].mxu0 %vm1306_vm1, %v3018_v26 }
 0x1cb   : > { %3029 = vrsqrt.f32 %v1224_v62  ;;  %v1226_v40 = vmax.f32 %v2694_v27, 1e-24  ;;  %v1098_v37 = vpop.f32.mrb[81].mxu1 }
 0x1cc   : > { %v3020_v60 = vpop.eup %3019  ;;  %v1225_v48 = vmax.f32 %v1098_v37, 1e-24 }
 0x1cd   : > { %v3022_v3 = vpop.eup %3021  ;;  %2781 = vmatprep.mubr.msk.f32.mxu0 %vm1306_vm1, %v3020_v60 }
 0x1ce   : > { %3031 = vrsqrt.f32 %v1225_v48  ;;  %v2697_v18 = vpop.f32.mrb[82].mxu1  ;;  %2782 = vmatmul.mubr.msk.f32.gmra.mrb[74].mxu0 %vm1306_vm1, %v3022_v3 }
 0x1cf   : > { %3033 = vrsqrt.f32 %v1226_v40  ;;  %v1228_v30 = vmax.f32 %v2697_v18, 1e-24  ;;  %v1108_v12 = vpop.f32.mrb[83].mxu1 }
 0x1d0   : > { %v3024_v33 = vpop.eup %3023  ;;  %v1227_v34 = vmax.f32 %v1108_v12, 1e-24 }
 0x1d1   : > { %v3026_v54 = vpop.eup %3025  ;;  %2784 = vmatprep.mubr.msk.f32.mxu0 %vm1306_vm1, %v3024_v33 }
 0x1d2   : > { %3035 = vrsqrt.f32 %v1227_v34  ;;  %v2700_v62 = vpop.f32.mrb[84].mxu1  ;;  %2785 = vmatmul.mubr.msk.f32.gmra.mrb[76].mxu0 %vm1306_vm1, %v3026_v54 }
 0x1d3   : > { %3037 = vrsqrt.f32 %v1228_v30  ;;  %v1230_v26 = vmax.f32 %v2700_v62, 1e-24  ;;  %v1118_v27 = vpop.f32.mrb[85].mxu1 }
 0x1d4   : > { %v3028_v37 = vpop.eup %3027  ;;  %v1229_v60 = vmax.f32 %v1118_v27, 1e-24 }
 0x1d5   : > { %v3030_v48 = vpop.eup %3029  ;;  %2787 = vmatprep.mubr.msk.f32.mxu0 %vm1306_vm1, %v3028_v37 }
 0x1d6   : > { %3039 = vrsqrt.f32 %v1229_v60  ;;  %v2703_v40 = vpop.f32.mrb[86].mxu1  ;;  %2788 = vmatmul.mubr.msk.f32.gmra.mrb[78].mxu0 %vm1306_vm1, %v3030_v48 }
 0x1d7   : > { %3041 = vrsqrt.f32 %v1230_v26  ;;  %v1232_v3 = vmax.f32 %v2703_v40, 1e-24  ;;  %v1128_v18 = vpop.f32.mrb[87].mxu1 }
 0x1d8   : > { %v3032_v12 = vpop.eup %3031  ;;  %v1231_v33 = vmax.f32 %v1128_v18, 1e-24 }
 0x1d9   : > { %v3034_v34 = vpop.eup %3033  ;;  %2790 = vmatprep.mubr.msk.f32.mxu0 %vm1306_vm1, %v3032_v12 }
 0x1da   : > { %3043 = vrsqrt.f32 %v1231_v33  ;;  %v2706_v30 = vpop.f32.mrb[88].mxu1  ;;  %2791 = vmatmul.mubr.msk.f32.gmra.mrb[80].mxu0 %vm1306_vm1, %v3034_v34 }
 0x1db   : > { %3045 = vrsqrt.f32 %v1232_v3  ;;  %v1234_v54 = vmax.f32 %v2706_v30, 1e-24  ;;  %v1138_v62 = vpop.f32.mrb[89].mxu1 }
 0x1dc   : > { %v3036_v27 = vpop.eup %3035  ;;  %v1233_v37 = vmax.f32 %v1138_v62, 1e-24 }
 0x1dd   : > { %v3038_v60 = vpop.eup %3037  ;;  %2793 = vmatprep.mubr.msk.f32.mxu0 %vm1306_vm1, %v3036_v27 }
 0x1de   : > { %3047 = vrsqrt.f32 %v1233_v37  ;;  %v2709_v26 = vpop.f32.mrb[90].mxu1  ;;  %2794 = vmatmul.mubr.msk.f32.gmra.mrb[82].mxu0 %vm1306_vm1, %v3038_v60 }
 0x1df   : > { %3049 = vrsqrt.f32 %v1234_v54  ;;  %v1236_v48 = vmax.f32 %v2709_v26, 1e-24  ;;  %v1148_v40 = vpop.f32.mrb[91].mxu1 }
 0x1e0   : > { %v3040_v18 = vpop.eup %3039  ;;  %v1235_v12 = vmax.f32 %v1148_v40, 1e-24 }
 0x1e1   : > { %v3042_v33 = vpop.eup %3041  ;;  %2796 = vmatprep.mubr.msk.f32.mxu0 %vm1306_vm1, %v3040_v18 }
 0x1e2   : > { %3051 = vrsqrt.f32 %v1235_v12  ;;  %v2712_v3 = vpop.f32.mrb[92].mxu1  ;;  %2797 = vmatmul.mubr.msk.f32.gmra.mrb[84].mxu0 %vm1306_vm1, %v3042_v33 }
 0x1e3   : > { %3053 = vrsqrt.f32 %v1236_v48  ;;  %v1238_v34 = vmax.f32 %v2712_v3, 1e-24  ;;  %v1158_v30 = vpop.f32.mrb[93].mxu1 }
 0x1e4   : > { %v3044_v62 = vpop.eup %3043  ;;  %v1237_v27 = vmax.f32 %v1158_v30, 1e-24 }
 0x1e5   : > { %v3046_v37 = vpop.eup %3045  ;;  %2799 = vmatprep.mubr.msk.f32.mxu0 %vm1306_vm1, %v3044_v62 }
 0x1e6   : > { %3055 = vrsqrt.f32 %v1237_v27  ;;  %v2715_v54 = vpop.f32.mrb[94].mxu1  ;;  %2800 = vmatmul.mubr.msk.f32.gmra.mrb[86].mxu0 %vm1306_vm1, %v3046_v37  ;;  %v3933_v37 = vld [vmem:[%s4211_s2] ss:$0 sm:$0xff] }
 0x1e7   : > { %3057 = vrsqrt.f32 %v1238_v34  ;;  %v1240_v60 = vmax.f32 %v2715_v54, 1e-24  ;;  %v1168_v26 = vpop.f32.mrb[95].mxu1 }
 0x1e8   : > { %v3048_v40 = vpop.eup %3047  ;;  %v1239_v18 = vmax.f32 %v1168_v26, 1e-24 }
 0x1e9   : > { %v3050_v12 = vpop.eup %3049  ;;  %2802 = vmatprep.mubr.msk.f32.mxu0 %vm1306_vm1, %v3048_v40 }
 0x1ea   : > { %3059 = vrsqrt.f32 %v1239_v18  ;;  %2803 = vmatmul.mubr.msk.f32.gmra.mrb[88].mxu0 %vm1306_vm1, %v3050_v12 }
 0x1eb   : > { %3061 = vrsqrt.f32 %v1240_v60 }
 0x1ec   : > { %v3052_v48 = vpop.eup %3051 }
 0x1ed   : > { %v3054_v33 = vpop.eup %3053  ;;  %2805 = vmatprep.mubr.msk.f32.mxu0 %vm1306_vm1, %v3052_v48 }
 0x1ee   : > { %2806 = vmatmul.mubr.msk.f32.gmra.mrb[90].mxu0 %vm1306_vm1, %v3054_v33 }
 0x1f0   : > { %v3056_v3 = vpop.eup %3055 }
 0x1f1   : > { %v3058_v34 = vpop.eup %3057  ;;  %2808 = vmatprep.mubr.msk.f32.mxu0 %vm1306_vm1, %v3056_v3 }
 0x1f2   : > { %2809 = vmatmul.mubr.msk.f32.gmra.mrb[92].mxu0 %vm1306_vm1, %v3058_v34 }
 0x1f4   : > { %v3060_v30 = vpop.eup %3059 }
 0x1f5   : > { %v3062_v62 = vpop.eup %3061  ;;  %2811 = vmatprep.mubr.msk.f32.mxu0 %vm1306_vm1, %v3060_v30 }
 0x1f6   : > { %2812 = vmatmul.mubr.msk.f32.gmra.mrb[94].mxu0 %vm1306_vm1, %v3062_v62 }
 0x24d   : > { %v2720_v27 = vpop.f32.mrb[32].mxu0 }
 0x24e   : > { %v1889_v54 = vmul.f32 %v2720_v27, %v3800_v8  ;;  %v1569_v60 = vpop.f32.mrb[33].mxu0 }
 0x24f   : > { %v1888_v26 = vmul.f32 %v1569_v60, %v3802_v16 }
 0x250   : > { %v1960_v40 = vadd.f32 %v3933_v37, %v1889_v54 }
 0x251   : > { %v1959_v18 = vadd.f32 %v3933_v37, %v1888_v26  ;;  %v2723_v12 = vpop.f32.mrb[34].mxu0 }
 0x252   : > { %2025 = vst.msk [vmem:[%s3939_s13 + $0x8] sm:$0xff] %vm2023_vm2, %v1960_v40  ;;  %v1891_v8 = vmul.f32 %v2723_v12, %v3804_v24  ;;  %v1579_v48 = vpop.f32.mrb[35].mxu0 }
 0x253   : > { %2024 = vst.msk [vmem:[%s3939_s13] sm:$0xff] %vm2023_vm2, %v1959_v18  ;;  %v1890_v33 = vmul.f32 %v1579_v48, %v3807_v28 }
 0x254   : > { %v1962_v3 = vadd.f32 %v3933_v37, %v1891_v8 }
 0x255   : > { %v1961_v16 = vadd.f32 %v3933_v37, %v1890_v33  ;;  %v2726_v34 = vpop.f32.mrb[36].mxu0 }
 0x256   : > { %2027 = vst.msk [vmem:[%s3939_s13 + $0x18] sm:$0xff] %vm2023_vm2, %v1962_v3  ;;  %v1893_v30 = vmul.f32 %v2726_v34, %v3810_v29  ;;  %v1589_v62 = vpop.f32.mrb[37].mxu0 }
 0x257   : > { %2026 = vst.msk [vmem:[%s3939_s13 + $0x10] sm:$0xff] %vm2023_vm2, %v1961_v16  ;;  %v1892_v24 = vmul.f32 %v1589_v62, %v3812_v6 }
 0x258   : > { %v1964_v27 = vadd.f32 %v3933_v37, %v1893_v30 }
 0x259   : > { %v1963_v28 = vadd.f32 %v3933_v37, %v1892_v24  ;;  %v2729_v54 = vpop.f32.mrb[38].mxu0 }
 0x25a   : > { %2029 = vst.msk [vmem:[%s3939_s13 + $0x28] sm:$0xff] %vm2023_vm2, %v1964_v27  ;;  %v1895_v60 = vmul.f32 %v2729_v54, %v3814_v42  ;;  %v1599_v26 = vpop.f32.mrb[39].mxu0 }
 0x25b   : > { %2028 = vst.msk [vmem:[%s3939_s13 + $0x20] sm:$0xff] %vm2023_vm2, %v1963_v28  ;;  %v1894_v29 = vmul.f32 %v1599_v26, %v3817_v47 }
 0x25c   : > { %v1966_v40 = vadd.f32 %v3933_v37, %v1895_v60 }
 0x25d   : > { %v1965_v6 = vadd.f32 %v3933_v37, %v1894_v29  ;;  %v2732_v18 = vpop.f32.mrb[40].mxu0 }
 0x25e   : > { %2031 = vst.msk [vmem:[%s3939_s13 + $0x38] sm:$0xff] %vm2023_vm2, %v1966_v40  ;;  %v1897_v12 = vmul.f32 %v2732_v18, %v3820_v31  ;;  %v1609_v8 = vpop.f32.mrb[41].mxu0 }
 0x25f   : > { %2030 = vst.msk [vmem:[%s3939_s13 + $0x30] sm:$0xff] %vm2023_vm2, %v1965_v6  ;;  %v1896_v42 = vmul.f32 %v1609_v8, %v3822_v39 }
 0x260   : > { %v1968_v48 = vadd.f32 %v3933_v37, %v1897_v12 }
 0x261   : > { %v1967_v47 = vadd.f32 %v3933_v37, %v1896_v42  ;;  %v2735_v33 = vpop.f32.mrb[42].mxu0 }
 0x262   : > { %2033 = vst.msk [vmem:[%s3939_s13 + $0x48] sm:$0xff] %vm2023_vm2, %v1968_v48  ;;  %v1899_v3 = vmul.f32 %v2735_v33, %v3824_v51  ;;  %v1619_v16 = vpop.f32.mrb[43].mxu0 }
 0x263   : > { %2032 = vst.msk [vmem:[%s3939_s13 + $0x40] sm:$0xff] %vm2023_vm2, %v1967_v47  ;;  %v1898_v31 = vmul.f32 %v1619_v16, %v3827_v58 }
 0x264   : > { %v1970_v34 = vadd.f32 %v3933_v37, %v1899_v3 }
 0x265   : > { %v1969_v39 = vadd.f32 %v3933_v37, %v1898_v31  ;;  %v2738_v30 = vpop.f32.mrb[44].mxu0 }
 0x266   : > { %2035 = vst.msk [vmem:[%s3939_s13 + $0x58] sm:$0xff] %vm2023_vm2, %v1970_v34  ;;  %v1901_v62 = vmul.f32 %v2738_v30, %v3830_v1  ;;  %v1629_v24 = vpop.f32.mrb[45].mxu0 }
 0x267   : > { %2034 = vst.msk [vmem:[%s3939_s13 + $0x50] sm:$0xff] %vm2023_vm2, %v1969_v39  ;;  %v1900_v51 = vmul.f32 %v1629_v24, %v3832_v14 }
 0x268   : > { %v1972_v27 = vadd.f32 %v3933_v37, %v1901_v62 }
 0x269   : > { %v1971_v58 = vadd.f32 %v3933_v37, %v1900_v51  ;;  %v2741_v28 = vpop.f32.mrb[46].mxu0 }
 0x26a   : > { %2037 = vst.msk [vmem:[%s3939_s13 + $0x68] sm:$0xff] %vm2023_vm2, %v1972_v27  ;;  %v1903_v54 = vmul.f32 %v2741_v28, %v3834_v25  ;;  %v1639_v60 = vpop.f32.mrb[47].mxu0 }
 0x26b   : > { %2036 = vst.msk [vmem:[%s3939_s13 + $0x60] sm:$0xff] %vm2023_vm2, %v1971_v58  ;;  %v1902_v1 = vmul.f32 %v1639_v60, %v3837_v5 }
 0x26c   : > { %v1974_v26 = vadd.f32 %v3933_v37, %v1903_v54 }
 0x26d   : > { %v1973_v14 = vadd.f32 %v3933_v37, %v1902_v1  ;;  %v2744_v29 = vpop.f32.mrb[48].mxu0 }
 0x26e   : > { %2039 = vst.msk [vmem:[%s3939_s13 + $0x78] sm:$0xff] %vm2023_vm2, %v1974_v26  ;;  %v1905_v40 = vmul.f32 %v2744_v29, %v3840_v35  ;;  %v1649_v6 = vpop.f32.mrb[49].mxu0 }
 0x26f   : > { %2038 = vst.msk [vmem:[%s3939_s13 + $0x70] sm:$0xff] %vm2023_vm2, %v1973_v14  ;;  %v1904_v25 = vmul.f32 %v1649_v6, %v3842_v9 }
 0x270   : > { %v1976_v18 = vadd.f32 %v3933_v37, %v1905_v40 }
 0x271   : > { %v1975_v5 = vadd.f32 %v3933_v37, %v1904_v25  ;;  %v2747_v12 = vpop.f32.mrb[50].mxu0 }
 0x272   : > { %2041 = vst.msk [vmem:[%s3939_s13 + $0x88] sm:$0xff] %vm2023_vm2, %v1976_v18  ;;  %v1907_v8 = vmul.f32 %v2747_v12, %v3844_v44  ;;  %v1659_v42 = vpop.f32.mrb[51].mxu0 }
 0x273   : > { %2040 = vst.msk [vmem:[%s3939_s13 + $0x80] sm:$0xff] %vm2023_vm2, %v1975_v5  ;;  %v1906_v35 = vmul.f32 %v1659_v42, %v3847_v53 }
 0x274   : > { %v1978_v48 = vadd.f32 %v3933_v37, %v1907_v8 }
 0x275   : > { %v1977_v9 = vadd.f32 %v3933_v37, %v1906_v35  ;;  %v2750_v47 = vpop.f32.mrb[52].mxu0 }
 0x276   : > { %2043 = vst.msk [vmem:[%s3939_s13 + $0x98] sm:$0xff] %vm2023_vm2, %v1978_v48  ;;  %v1909_v33 = vmul.f32 %v2750_v47, %v3850_v11  ;;  %v1669_v3 = vpop.f32.mrb[53].mxu0 }
 0x277   : > { %2042 = vst.msk [vmem:[%s3939_s13 + $0x90] sm:$0xff] %vm2023_vm2, %v1977_v9  ;;  %v1908_v44 = vmul.f32 %v1669_v3, %v3852_v20 }
 0x278   : > { %v1980_v16 = vadd.f32 %v3933_v37, %v1909_v33 }
 0x279   : > { %v1979_v53 = vadd.f32 %v3933_v37, %v1908_v44  ;;  %v2753_v31 = vpop.f32.mrb[54].mxu0 }
 0x27a   : > { %2045 = vst.msk [vmem:[%s3939_s13 + $0xa8] sm:$0xff] %vm2023_vm2, %v1980_v16  ;;  %v1911_v34 = vmul.f32 %v2753_v31, %v3854_v22  ;;  %v1679_v39 = vpop.f32.mrb[55].mxu0 }
 0x27b   : > { %2044 = vst.msk [vmem:[%s3939_s13 + $0xa0] sm:$0xff] %vm2023_vm2, %v1979_v53  ;;  %v1910_v11 = vmul.f32 %v1679_v39, %v3857_v32 }
 0x27c   : > { %v1982_v30 = vadd.f32 %v3933_v37, %v1911_v34 }
 0x27d   : > { %v1981_v20 = vadd.f32 %v3933_v37, %v1910_v11  ;;  %v2756_v62 = vpop.f32.mrb[56].mxu0 }
 0x27e   : > { %2047 = vst.msk [vmem:[%s3939_s13 + $0xb8] sm:$0xff] %vm2023_vm2, %v1982_v30  ;;  %v1913_v24 = vmul.f32 %v2756_v62, %v3860_v46  ;;  %v1689_v51 = vpop.f32.mrb[57].mxu0 }
 0x27f   : > { %2046 = vst.msk [vmem:[%s3939_s13 + $0xb0] sm:$0xff] %vm2023_vm2, %v1981_v20  ;;  %v1912_v22 = vmul.f32 %v1689_v51, %v3862_v63 }
 0x280   : > { %v1984_v27 = vadd.f32 %v3933_v37, %v1913_v24 }
 0x281   : > { %v1983_v32 = vadd.f32 %v3933_v37, %v1912_v22  ;;  %v2759_v58 = vpop.f32.mrb[58].mxu0 }
 0x282   : > { %2049 = vst.msk [vmem:[%s3939_s13 + $0xc8] sm:$0xff] %vm2023_vm2, %v1984_v27  ;;  %v1915_v28 = vmul.f32 %v2759_v58, %v3864_v56  ;;  %v1699_v54 = vpop.f32.mrb[59].mxu0 }
 0x283   : > { %2048 = vst.msk [vmem:[%s3939_s13 + $0xc0] sm:$0xff] %vm2023_vm2, %v1983_v32  ;;  %v1914_v46 = vmul.f32 %v1699_v54, %v3867_v55 }
 0x284   : > { %v1986_v60 = vadd.f32 %v3933_v37, %v1915_v28 }
 0x285   : > { %v1985_v63 = vadd.f32 %v3933_v37, %v1914_v46  ;;  %v2762_v1 = vpop.f32.mrb[60].mxu0 }
 0x286   : > { %2051 = vst.msk [vmem:[%s3939_s13 + $0xd8] sm:$0xff] %vm2023_vm2, %v1986_v60  ;;  %v1917_v26 = vmul.f32 %v2762_v1, %v3870_v4  ;;  %v1709_v14 = vpop.f32.mrb[61].mxu0 }
 0x287   : > { %2050 = vst.msk [vmem:[%s3939_s13 + $0xd0] sm:$0xff] %vm2023_vm2, %v1985_v63  ;;  %v1916_v56 = vmul.f32 %v1709_v14, %v3872_v49 }
 0x288   : > { %v1988_v29 = vadd.f32 %v3933_v37, %v1917_v26 }
 0x289   : > { %v1987_v55 = vadd.f32 %v3933_v37, %v1916_v56  ;;  %v2765_v40 = vpop.f32.mrb[62].mxu0 }
 0x28a   : > { %2053 = vst.msk [vmem:[%s3939_s13 + $0xe8] sm:$0xff] %vm2023_vm2, %v1988_v29  ;;  %v1919_v6 = vmul.f32 %v2765_v40, %v3874_v41  ;;  %v1719_v25 = vpop.f32.mrb[63].mxu0  ;;  %v4247_v40 = vld [vmem:[#allocation5_spill] sm:$0xff] }
 0x28b   : > { %2052 = vst.msk [vmem:[%s3939_s13 + $0xe0] sm:$0xff] %vm2023_vm2, %v1987_v55  ;;  %v1918_v4 = vmul.f32 %v1719_v25, %v3877_v61 }
 0x28c   : > { %v1990_v18 = vadd.f32 %v3933_v37, %v1919_v6 }
 0x28d   : > { %v1989_v49 = vadd.f32 %v3933_v37, %v1918_v4  ;;  %v2768_v5 = vpop.f32.mrb[64].mxu0 }
 0x28e   : > { %2055 = vst.msk [vmem:[%s3939_s13 + $0xf8] sm:$0xff] %vm2023_vm2, %v1990_v18  ;;  %v1921_v12 = vmul.f32 %v2768_v5, %v3736_v36  ;;  %v1729_v8 = vpop.f32.mrb[65].mxu0  ;;  %v4249_v5 = vld [vmem:[#allocation7_spill] sm:$0xff] }
 0x28f   : > { %2054 = vst.msk [vmem:[%s3939_s13 + $0xf0] sm:$0xff] %vm2023_vm2, %v1989_v49  ;;  %v1920_v41 = vmul.f32 %v1729_v8, %v3738_v38 }
 0x290   : > { %v1992_v42 = vadd.f32 %v3933_v37, %v1921_v12 }
 0x291   : > { %v1991_v61 = vadd.f32 %v3933_v37, %v1920_v41  ;;  %v2771_v35 = vpop.f32.mrb[66].mxu0  ;;  %v4250_v41 = vld [vmem:[#allocation8_spill] sm:$0xff] }
 0x292   : > { %2057 = vst.msk [vmem:[%s3939_s13 + $0x108] sm:$0xff] %vm2023_vm2, %v1992_v42  ;;  %v1923_v48 = vmul.f32 %v2771_v35, %v3740_v43  ;;  %v1739_v9 = vpop.f32.mrb[67].mxu0 }
 0x293   : > { %2056 = vst.msk [vmem:[%s3939_s13 + $0x100] sm:$0xff] %vm2023_vm2, %v1991_v61  ;;  %v1922_v36 = vmul.f32 %v1739_v9, %v3742_v45  ;;  %v4251_v9 = vld [vmem:[#allocation9_spill] sm:$0xff] }
 0x294   : > { %v1994_v47 = vadd.f32 %v3933_v37, %v1923_v48 }
 0x295   : > { %v1993_v38 = vadd.f32 %v3933_v37, %v1922_v36  ;;  %v2774_v33 = vpop.f32.mrb[68].mxu0 }
 0x296   : > { %2059 = vst.msk [vmem:[%s3939_s13 + $0x118] sm:$0xff] %vm2023_vm2, %v1994_v47  ;;  %v1925_v3 = vmul.f32 %v2774_v33, %v3744_v50  ;;  %v1749_v44 = vpop.f32.mrb[69].mxu0 }
 0x297   : > { %2058 = vst.msk [vmem:[%s3939_s13 + $0x110] sm:$0xff] %vm2023_vm2, %v1993_v38  ;;  %v1924_v43 = vmul.f32 %v1749_v44, %v3746_v52  ;;  %v4252_v38 = vld [vmem:[#allocation10_spill] sm:$0xff] }
 0x298   : > { %v1996_v16 = vadd.f32 %v3933_v37, %v1925_v3 }
 0x299   : > { %v1995_v45 = vadd.f32 %v3933_v37, %v1924_v43  ;;  %v2777_v53 = vpop.f32.mrb[70].mxu0 }
 0x29a   : > { %2061 = vst.msk [vmem:[%s3939_s13 + $0x128] sm:$0xff] %vm2023_vm2, %v1996_v16  ;;  %v1927_v31 = vmul.f32 %v2777_v53, %v3748_v57  ;;  %v1759_v34 = vpop.f32.mrb[71].mxu0  ;;  %v4253_v16 = vld [vmem:[#allocation11_spill] sm:$0xff] }
 0x29b   : > { %2060 = vst.msk [vmem:[%s3939_s13 + $0x120] sm:$0xff] %vm2023_vm2, %v1995_v45  ;;  %v1926_v50 = vmul.f32 %v1759_v34, %v3750_v59 }
 0x29c   : > { %v1998_v39 = vadd.f32 %v3933_v37, %v1927_v31  ;;  %v4254_v31 = vld [vmem:[#allocation12_spill] sm:$0xff] }
 0x29d   : > { %v1997_v52 = vadd.f32 %v3933_v37, %v1926_v50  ;;  %v2780_v11 = vpop.f32.mrb[72].mxu0 }
 0x29e   : > { %2063 = vst.msk [vmem:[%s3939_s13 + $0x138] sm:$0xff] %vm2023_vm2, %v1998_v39  ;;  %v1929_v30 = vmul.f32 %v2780_v11, %v3752_v0  ;;  %v1769_v20 = vpop.f32.mrb[73].mxu0  ;;  %v4255_v11 = vld [vmem:[#allocation13_spill] sm:$0xff] }
 0x29f   : > { %2062 = vst.msk [vmem:[%s3939_s13 + $0x130] sm:$0xff] %vm2023_vm2, %v1997_v52  ;;  %v1928_v57 = vmul.f32 %v1769_v20, %v3754_v2 }
 0x2a0   : > { %v2000_v62 = vadd.f32 %v3933_v37, %v1929_v30 }
 0x2a1   : > { %v1999_v59 = vadd.f32 %v3933_v37, %v1928_v57  ;;  %v2783_v24 = vpop.f32.mrb[74].mxu0  ;;  %v4256_v57 = vld [vmem:[#allocation14_spill] sm:$0xff] }
 0x2a2   : > { %2065 = vst.msk [vmem:[%s3939_s13 + $0x148] sm:$0xff] %vm2023_vm2, %v2000_v62  ;;  %v1931_v51 = vmul.f32 %v2783_v24, %v3756_v7  ;;  %v1779_v22 = vpop.f32.mrb[75].mxu0 }
 0x2a3   : > { %2064 = vst.msk [vmem:[%s3939_s13 + $0x140] sm:$0xff] %vm2023_vm2, %v1999_v59  ;;  %v1930_v0 = vmul.f32 %v1779_v22, %v3758_v10  ;;  %v4257_v22 = vld [vmem:[#allocation15_spill] sm:$0xff] }
 0x2a4   : > { %v2002_v27 = vadd.f32 %v3933_v37, %v1931_v51 }
 0x2a5   : > { %v2001_v2 = vadd.f32 %v3933_v37, %v1930_v0  ;;  %v2786_v32 = vpop.f32.mrb[76].mxu0 }
 0x2a6   : > { %2067 = vst.msk [vmem:[%s3939_s13 + $0x158] sm:$0xff] %vm2023_vm2, %v2002_v27  ;;  %v1933_v58 = vmul.f32 %v2786_v32, %v3760_v13  ;;  %v1789_v28 = vpop.f32.mrb[77].mxu0 }
 0x2a7   : > { %2066 = vst.msk [vmem:[%s3939_s13 + $0x150] sm:$0xff] %vm2023_vm2, %v2001_v2  ;;  %v1932_v7 = vmul.f32 %v1789_v28, %v3762_v15  ;;  %v4258_v2 = vld [vmem:[#allocation16_spill] sm:$0xff] }
 0x2a8   : > { %v2004_v54 = vadd.f32 %v3933_v37, %v1933_v58 }
 0x2a9   : > { %v2003_v10 = vadd.f32 %v3933_v37, %v1932_v7  ;;  %v2789_v46 = vpop.f32.mrb[78].mxu0 }
 0x2aa   : > { %2069 = vst.msk [vmem:[%s3939_s13 + $0x168] sm:$0xff] %vm2023_vm2, %v2004_v54  ;;  %v1935_v60 = vmul.f32 %v2789_v46, %v3764_v17  ;;  %v1799_v63 = vpop.f32.mrb[79].mxu0  ;;  %v4259_v54 = vld [vmem:[#allocation17_spill] sm:$0xff] }
 0x2ab   : > { %2068 = vst.msk [vmem:[%s3939_s13 + $0x160] sm:$0xff] %vm2023_vm2, %v2003_v10  ;;  %v1934_v13 = vmul.f32 %v1799_v63, %v3766_v19 }
 0x2ac   : > { %v2006_v1 = vadd.f32 %v3933_v37, %v1935_v60  ;;  %v4260_v60 = vld [vmem:[#allocation18_spill] sm:$0xff] }
 0x2ad   : > { %v2005_v15 = vadd.f32 %v3933_v37, %v1934_v13  ;;  %v2792_v26 = vpop.f32.mrb[80].mxu0 }
 0x2ae   : > { %2071 = vst.msk [vmem:[%s3939_s13 + $0x178] sm:$0xff] %vm2023_vm2, %v2006_v1  ;;  %v1937_v14 = vmul.f32 %v2792_v26, %v3768_v21  ;;  %v1809_v56 = vpop.f32.mrb[81].mxu0  ;;  %v4248_v21 = vld [vmem:[#allocation6_spill] sm:$0xff] }
 0x2af   : > { %2070 = vst.msk [vmem:[%s3939_s13 + $0x170] sm:$0xff] %vm2023_vm2, %v2005_v15  ;;  %v1936_v17 = vmul.f32 %v1809_v56, %v3770_v23 }
 0x2b0   : > { %v2008_v29 = vadd.f32 %v3933_v37, %v1937_v14 }
 0x2b1   : > { %v2007_v19 = vadd.f32 %v3933_v37, %v1936_v17  ;;  %v2795_v55 = vpop.f32.mrb[82].mxu0 }
 0x2b2   : > { %2073 = vst.msk [vmem:[%s3939_s13 + $0x188] sm:$0xff] %vm2023_vm2, %v2008_v29  ;;  %v1939_v6 = vmul.f32 %v2795_v55, %v4247_v40  ;;  %v1819_v25 = vpop.f32.mrb[83].mxu0 }
 0x2b3   : > { %2072 = vst.msk [vmem:[%s3939_s13 + $0x180] sm:$0xff] %vm2023_vm2, %v2007_v19  ;;  %v1938_v4 = vmul.f32 %v1819_v25, %v4248_v21 }
 0x2b4   : > { %v2010_v18 = vadd.f32 %v3933_v37, %v1939_v6 }
 0x2b5   : > { %v2009_v23 = vadd.f32 %v3933_v37, %v1938_v4  ;;  %v2798_v49 = vpop.f32.mrb[84].mxu0 }
 0x2b6   : > { %2075 = vst.msk [vmem:[%s3939_s13 + $0x198] sm:$0xff] %vm2023_vm2, %v2010_v18  ;;  %v1941_v12 = vmul.f32 %v2798_v49, %v4249_v5  ;;  %v1829_v8 = vpop.f32.mrb[85].mxu0 }
 0x2b7   : > { %2074 = vst.msk [vmem:[%s3939_s13 + $0x190] sm:$0xff] %vm2023_vm2, %v2009_v23  ;;  %v1940_v42 = vmul.f32 %v1829_v8, %v4250_v41 }
 0x2b8   : > { %v2012_v61 = vadd.f32 %v3933_v37, %v1941_v12 }
 0x2b9   : > { %v2011_v35 = vadd.f32 %v3933_v37, %v1940_v42  ;;  %v2801_v48 = vpop.f32.mrb[86].mxu0 }
 0x2ba   : > { %2077 = vst.msk [vmem:[%s3939_s13 + $0x1a8] sm:$0xff] %vm2023_vm2, %v2012_v61  ;;  %v1943_v36 = vmul.f32 %v2801_v48, %v4251_v9  ;;  %v1839_v47 = vpop.f32.mrb[87].mxu0 }
 0x2bb   : > { %2076 = vst.msk [vmem:[%s3939_s13 + $0x1a0] sm:$0xff] %vm2023_vm2, %v2011_v35  ;;  %v1942_v33 = vmul.f32 %v1839_v47, %v4252_v38 }
 0x2bc   : > { %v2014_v3 = vadd.f32 %v3933_v37, %v1943_v36 }
 0x2bd   : > { %v2013_v44 = vadd.f32 %v3933_v37, %v1942_v33  ;;  %v2804_v43 = vpop.f32.mrb[88].mxu0 }
 0x2be   : > { %2079 = vst.msk [vmem:[%s3939_s13 + $0x1b8] sm:$0xff] %vm2023_vm2, %v2014_v3  ;;  %v1945_v45 = vmul.f32 %v2804_v43, %v4253_v16  ;;  %v1849_v53 = vpop.f32.mrb[89].mxu0 }
 0x2bf   : > { %2078 = vst.msk [vmem:[%s3939_s13 + $0x1b0] sm:$0xff] %vm2023_vm2, %v2013_v44  ;;  %v1944_v34 = vmul.f32 %v1849_v53, %v4254_v31 }
 0x2c0   : > { %v2016_v50 = vadd.f32 %v3933_v37, %v1945_v45 }
 0x2c1   : > { %v2015_v39 = vadd.f32 %v3933_v37, %v1944_v34  ;;  %v2807_v52 = vpop.f32.mrb[90].mxu0 }
 0x2c2   : > { %2081 = vst.msk [vmem:[%s3939_s13 + $0x1c8] sm:$0xff] %vm2023_vm2, %v2016_v50  ;;  %v1947_v30 = vmul.f32 %v2807_v52, %v4255_v11  ;;  %v1859_v20 = vpop.f32.mrb[91].mxu0 }
 0x2c3   : > { %2080 = vst.msk [vmem:[%s3939_s13 + $0x1c0] sm:$0xff] %vm2023_vm2, %v2015_v39  ;;  %v1946_v62 = vmul.f32 %v1859_v20, %v4256_v57 }
 0x2c4   : > { %v2018_v59 = vadd.f32 %v3933_v37, %v1947_v30 }
 0x2c5   : > { %v2017_v24 = vadd.f32 %v3933_v37, %v1946_v62  ;;  %v2810_v51 = vpop.f32.mrb[92].mxu0 }
 0x2c6   : > { %2083 = vst.msk [vmem:[%s3939_s13 + $0x1d8] sm:$0xff] %vm2023_vm2, %v2018_v59  ;;  %v1949_v0 = vmul.f32 %v2810_v51, %v4257_v22  ;;  %v1869_v27 = vpop.f32.mrb[93].mxu0 }
 0x2c7   : > { %2082 = vst.msk [vmem:[%s3939_s13 + $0x1d0] sm:$0xff] %vm2023_vm2, %v2017_v24  ;;  %v1948_v32 = vmul.f32 %v1869_v27, %v4258_v2 }
 0x2c8   : > { %v2020_v58 = vadd.f32 %v3933_v37, %v1949_v0 }
 0x2c9   : > { %v2019_v28 = vadd.f32 %v3933_v37, %v1948_v32  ;;  %v2813_v7 = vpop.f32.mrb[94].mxu0 }
 0x2ca   : > { %2085 = vst.msk [vmem:[%s3939_s13 + $0x1e8] sm:$0xff] %vm2023_vm2, %v2020_v58  ;;  %v1951_v10 = vmul.f32 %v2813_v7, %v4259_v54  ;;  %v1879_v46 = vpop.f32.mrb[95].mxu0 }
 0x2cb   : > { %2084 = vst.msk [vmem:[%s3939_s13 + $0x1e0] sm:$0xff] %vm2023_vm2, %v2019_v28  ;;  %v1950_v63 = vmul.f32 %v1879_v46, %v4260_v60 }
 0x2cc   : > { %v2022_v13 = vadd.f32 %v3933_v37, %v1951_v10 }
 0x2cd   : > { %v2021_v1 = vadd.f32 %v3933_v37, %v1950_v63 }
 0x2ce   : > { %2087 = vst.msk [vmem:[%s3939_s13 + $0x1f8] sm:$0xff] %vm2023_vm2, %v2022_v13 }
 0x2cf   : > { %2086 = vst.msk [vmem:[%s3939_s13 + $0x1f0] sm:$0xff] %vm2023_vm2, %v2021_v1 }
 0x2d0 PF: > { %p15_p8 = scmp.ge.s32.totalorder %s3182_s23, 4   ;;  %s4261_s18 = smov %s3119_s19 }
 0x2d1   : > { %s4262_s19 = smov %s3123_s20  ;;  %s4263_s20 = smov %s3192_s26 }
 0x2d2   : > { %s4264_s21 = smov %s3182_s23  ;;  %17 = sbr.rel (!%p15_p8) target bundleno = 3 (0x3), region = 80 }
 0x2d9   :  { %2110 = vsyncpa [#allocation3], 1 }
 0x2da   :  { %2112 = vsyncpa [#allocation3 + $0x1], 1 }

</bundles_post_ra>
